<compile_context>
chip_gen: v6e
topology: v6e:2x2x1
jax: 0.10.0
libtpu: 0.0.40
codegen_flags: <defaults>
</compile_context>

<pallas_src>
import math
from functools import partial

import jax
import jax.numpy as jnp
from jax.experimental import pallas as pl
from jax.experimental.pallas import tpu as pltpu

_VMEM_LIMIT = 32 * 1024 * 1024  # conservative: fits default scoped VMEM on v5e/v6e/v7x


def _cp():
    return pltpu.CompilerParams(dimension_semantics=("parallel",),
                                vmem_limit_bytes=_VMEM_LIMIT)


def _pick_row_tile(n, max_tile=512):
    """Largest multiple-of-8 divisor of n (<= max_tile) that leaves >=2 tiles."""
    best = None
    for t in range(8, min(max_tile, n) + 1, 8):
        if n % t == 0 and n // t >= 2:
            best = t
    return best if best is not None else n  # fall back to a single full block


def _gelu(x):
    # TODO(synk): torch F.gelu default is the exact erf form; tanh approximation
    # is used here (erf lowering on Mosaic is not guaranteed).
    c = 0.7978845608028654  # sqrt(2/pi)
    return 0.5 * x * (1.0 + jnp.tanh(c * (x + 0.044715 * x * x * x)))


# ----------------------------------------------------------------------------
# Kernel A: adaLN_modulation = SiLU -> Linear(C,C) -> [Dropout=id] -> Linear(C,6C)
# ----------------------------------------------------------------------------
def _adaln_kernel(x_ref, w1_ref, b1_ref, w2_ref, b2_ref, o_ref):
    x = x_ref[...]
    h = x * jax.nn.sigmoid(x)                                    # SiLU (f32)
    h = jnp.dot(h.astype(jnp.bfloat16), w1_ref[...],
                preferred_element_type=jnp.float32) + b1_ref[...]
    o_ref[...] = jnp.dot(h.astype(jnp.bfloat16), w2_ref[...],
                         preferred_element_type=jnp.float32) + b2_ref[...]


def pallas_adaln_modulation(cond2d, w1, b1, w2, b2):
    n, c = cond2d.shape
    c6 = w2.shape[1]
    tm = _pick_row_tile(n)
    return pl.pallas_call(
        _adaln_kernel,
        out_shape=jax.ShapeDtypeStruct((n, c6), jnp.float32),
        grid=(n // tm,),
        in_specs=[
            pl.BlockSpec((tm, c), lambda i: (i, 0)),
            pl.BlockSpec((c, c), lambda i: (0, 0)),
            pl.BlockSpec((1, c), lambda i: (0, 0)),
            pl.BlockSpec((c, c6), lambda i: (0, 0)),
            pl.BlockSpec((1, c6), lambda i: (0, 0)),
        ],
        out_specs=pl.BlockSpec((tm, c6), lambda i: (i, 0)),
        compiler_params=_cp(),
    )(cond2d, w1, b1.reshape(1, c), w2, b2.reshape(1, c6))


# ----------------------------------------------------------------------------
# Kernel B: LayerNorm + modulate + (fused QKV) projection, row-tiled.
# ----------------------------------------------------------------------------
def _ln_mod_matmul_kernel(c, mod_off, eps, x_ref, g_ref, b_ref, mod_ref, w_ref, o_ref):
    x = x_ref[...]
    mu = jnp.mean(x, axis=-1, keepdims=True)
    var = jnp.mean(jnp.square(x - mu), axis=-1, keepdims=True)
    y = (x - mu) * jax.lax.rsqrt(var + eps) * g_ref[...] + b_ref[...]
    shift = mod_ref[:, mod_off * c:(mod_off + 1) * c]
    scale = mod_ref[:, (mod_off + 1) * c:(mod_off + 2) * c]
    y = y * (1.0 + scale) + shift                                # modulate()
    o_ref[...] = jnp.dot(y.astype(jnp.bfloat16), w_ref[...],
                         preferred_element_type=jnp.float32)


def pallas_ln_mod_matmul(x2d, gamma, beta, mod2d, w, mod_off, eps=1e-5):
    n, c = x2d.shape
    f = w.shape[1]
    c6 = mod2d.shape[1]
    tm = _pick_row_tile(n)
    return pl.pallas_call(
        partial(_ln_mod_matmul_kernel, c, mod_off, eps),
        out_shape=jax.ShapeDtypeStruct((n, f), jnp.float32),
        grid=(n // tm,),
        in_specs=[
            pl.BlockSpec((tm, c), lambda i: (i, 0)),
            pl.BlockSpec((1, c), lambda i: (0, 0)),
            pl.BlockSpec((1, c), lambda i: (0, 0)),
            pl.BlockSpec((tm, c6), lambda i: (i, 0)),
            pl.BlockSpec((c, f), lambda i: (0, 0)),
        ],
        out_specs=pl.BlockSpec((tm, f), lambda i: (i, 0)),
        compiler_params=_cp(),
    )(x2d, gamma.reshape(1, c), beta.reshape(1, c), mod2d, w)


# ----------------------------------------------------------------------------
# Kernel C: multi-head self-attention (all heads per batch element; lane-dense
# [T, 3C] / [T, C] tiles; finite mask constant; EUP reciprocal for softmax).
# ----------------------------------------------------------------------------
def _mha_kernel(num_heads, dh, scaling, qkv_ref, m_ref, o_ref):
    c = num_heads * dh
    qkv = qkv_ref[0]                                   # [T, 3C] f32
    mk = m_ref[0]                                      # [1, T] (1.0 where key is padded)
    q = qkv[:, :c]
    k = qkv[:, c:2 * c]
    v = qkv[:, 2 * c:]
    outs = []
    for h in range(num_heads):                         # static unroll over heads
        sl = slice(h * dh, (h + 1) * dh)
        qh = (q[:, sl] * scaling).astype(jnp.bfloat16)
        kh = k[:, sl].astype(jnp.bfloat16)
        vh = v[:, sl].astype(jnp.bfloat16)
        s = jax.lax.dot_general(qh, kh, (((1,), (1,)), ((), ())),
                                preferred_element_type=jnp.float32)   # [T, T]
        s = jnp.where(mk > 0.0, -1e30, s)              # finite mask: no -inf NaN path
        m = jnp.max(s, axis=-1, keepdims=True)
        p = jnp.exp(s - m)
        denom = jnp.sum(p, axis=-1, keepdims=True)
        p = p * pl.reciprocal(denom, approx=True)
        outs.append(jnp.dot(p.astype(jnp.bfloat16), vh,
                            preferred_element_type=jnp.float32))
    o_ref[0] = jnp.concatenate(outs, axis=-1)          # [T, C]


def pallas_mha(qkv, kpm, num_heads):
    b, t, c3 = qkv.shape
    c = c3 // 3
    dh = c // num_heads
    return pl.pallas_call(
        partial(_mha_kernel, num_heads, dh, float(dh) ** -0.5),
        out_shape=jax.ShapeDtypeStruct((b, t, c), jnp.float32),
        grid=(b,),
        in_specs=[
            pl.BlockSpec((1, t, c3), lambda i: (i, 0, 0)),
            pl.BlockSpec((1, 1, t), lambda i: (i, 0, 0)),
        ],
        out_specs=pl.BlockSpec((1, t, c), lambda i: (i, 0, 0)),
        compiler_params=_cp(),
    )(qkv, kpm)


# ----------------------------------------------------------------------------
# Kernels D/F: projection + gate + residual + nonpadding mask epilogue.
#   out = (residual + (x @ W + b) * mod[:, g*C:(g+1)*C]) * nonpad
# ----------------------------------------------------------------------------
def _proj_epilogue_kernel(c, gate_idx, x_ref, w_ref, b_ref, mod_ref, res_ref,
                          np_ref, o_ref):
    y = jnp.dot(x_ref[...].astype(jnp.bfloat16), w_ref[...],
                preferred_element_type=jnp.float32) + b_ref[...]
    gate = mod_ref[:, gate_idx * c:(gate_idx + 1) * c]
    o_ref[...] = (res_ref[...] + y * gate) * np_ref[...]


def pallas_proj_epilogue(x2d, w, bias, mod2d, gate_idx, res2d, nonpad2d):
    n, kdim = x2d.shape
    c = w.shape[1]
    c6 = mod2d.shape[1]
    tm = _pick_row_tile(n)
    return pl.pallas_call(
        partial(_proj_epilogue_kernel, c, gate_idx),
        out_shape=jax.ShapeDtypeStruct((n, c), jnp.float32),
        grid=(n // tm,),
        in_specs=[
            pl.BlockSpec((tm, kdim), lambda i: (i, 0)),
            pl.BlockSpec((kdim, c), lambda i: (0, 0)),
            pl.BlockSpec((1, c), lambda i: (0, 0)),
            pl.BlockSpec((tm, c6), lambda i: (i, 0)),
            pl.BlockSpec((tm, c), lambda i: (i, 0)),
            pl.BlockSpec((tm, 1), lambda i: (i, 0)),
        ],
        out_specs=pl.BlockSpec((tm, c), lambda i: (i, 0)),
        compiler_params=_cp(),
    )(x2d, w, bias.reshape(1, c), mod2d, res2d, nonpad2d)


# ----------------------------------------------------------------------------
# Kernel E: LayerNorm2 + modulate + FFN conv1d (SAME) as a single im2col matmul
#           + K^-0.5 scale + GELU.   Output lane width 4C (>=128 lane-dense).
# ----------------------------------------------------------------------------
def _ln_mod_conv_kernel(c, ksz, t, eps, x_ref, g_ref, b_ref, mod_ref, w_ref,
                        cb_ref, o_ref):
    x = x_ref[0]                                       # [T, C]
    mu = jnp.mean(x, axis=-1, keepdims=True)
    var = jnp.mean(jnp.square(x - mu), axis=-1, keepdims=True)
    y = (x - mu) * jax.lax.rsqrt(var + eps) * g_ref[...] + b_ref[...]
    m = mod_ref[0]                                     # [T, 6C]
    shift = m[:, 3 * c:4 * c]
    scale = m[:, 4 * c:5 * c]
    y = y * (1.0 + scale) + shift                      # modulate()
    pad = ksz // 2
    z = jnp.zeros((pad, c), jnp.float32)
    xp = jnp.concatenate([z, y, z], axis=0)            # zero-padded time, [T+K-1, C]
    # im2col: one [T, K*C] @ [K*C, 4C] matmul instead of K tiny matmuls.
    cols = jnp.concatenate([xp[kk:kk + t, :] for kk in range(ksz)], axis=-1)
    acc = jnp.dot(cols.astype(jnp.bfloat16), w_ref[...],
                  preferred_element_type=jnp.float32)
    acc = (acc + cb_ref[...]) * (float(ksz) ** -0.5)
    o_ref[0] = _gelu(acc)


def pallas_ln_mod_conv_gelu(x3d, mod3d, gamma, beta, w_im2col, cbias,
                            kernel_size, eps=1e-5):
    b, t, c = x3d.shape
    f = w_im2col.shape[1]
    return pl.pallas_call(
        partial(_ln_mod_conv_kernel, c, kernel_size, t, eps),
        out_shape=jax.ShapeDtypeStruct((b, t, f), jnp.float32),
        grid=(b,),
        in_specs=[
            pl.BlockSpec((1, t, c), lambda i: (i, 0, 0)),
            pl.BlockSpec((1, c), lambda i: (0, 0)),
            pl.BlockSpec((1, c), lambda i: (0, 0)),
            pl.BlockSpec((1, t, 6 * c), lambda i: (i, 0, 0)),
            pl.BlockSpec((kernel_size * c, f), lambda i: (0, 0)),
            pl.BlockSpec((1, f), lambda i: (0, 0)),
        ],
        out_specs=pl.BlockSpec((1, t, f), lambda i: (i, 0, 0)),
        compiler_params=_cp(),
    )(x3d, gamma.reshape(1, c), beta.reshape(1, c), mod3d, w_im2col,
      cbias.reshape(1, f))


# ----------------------------------------------------------------------------
# AdaLNSALayer.forward
# ----------------------------------------------------------------------------
@partial(jax.jit, static_argnames=("num_heads", "kernel_size"))
def adaln_sa_layer_forward(params, x, cond, encoder_padding_mask, *,
                           num_heads, kernel_size):
    """x, cond: [T, B, C]; encoder_padding_mask: [B, T] (True where padded)."""
    t, b, c = x.shape
    n = b * t
    # single layout change: work batch-major internally ([B*T, C] rows)
    x_bt = jnp.transpose(x, (1, 0, 2)).reshape(n, c)
    cond_bt = jnp.transpose(cond, (1, 0, 2)).reshape(n, c)
    pad_f = encoder_padding_mask.astype(jnp.float32)          # [B, T]
    nonpad = (1.0 - pad_f).reshape(n, 1)
    kpm = pad_f[:, None, :]                                   # [B, 1, T]

    # adaLN modulation -> [N, 6C] (shift_msa|scale_msa|gate_msa|shift_mlp|scale_mlp|gate_mlp)
    mod = pallas_adaln_modulation(cond_bt, params["ada_w1"], params["ada_b1"],
                                  params["ada_w2"], params["ada_b2"])

    # ---- self-attention branch ----
    qkv = pallas_ln_mod_matmul(x_bt, params["ln1_g"], params["ln1_b"],
                               mod, params["qkv_w"], mod_off=0)        # [N, 3C]
    attn = pallas_mha(qkv.reshape(b, t, 3 * c), kpm, num_heads)        # [B, T, C]
    zero_c = jnp.zeros((c,), jnp.float32)                              # out_proj bias=False
    x1 = pallas_proj_epilogue(attn.reshape(n, c), params["attn_out_w"], zero_c,
                              mod, 2, x_bt, nonpad)                    # [N, C]

    # ---- FFN branch ----
    h = pallas_ln_mod_conv_gelu(x1.reshape(b, t, c), mod.reshape(b, t, 6 * c),
                                params["ln2_g"], params["ln2_b"],
                                params["ffn1_w"], params["ffn1_b"],
                                kernel_size)                           # [B, T, 4C]
    x2 = pallas_proj_epilogue(h.reshape(n, 4 * c), params["ffn2_w"],
                              params["ffn2_b"], mod, 5, x1, nonpad)    # [N, C]

    return jnp.transpose(x2.reshape(b, t, c), (1, 0, 2))               # [T, B, C]


# ----------------------------------------------------------------------------
# deterministic parameter init (matmul weights stored in bf16; biases/LN in f32)
# ----------------------------------------------------------------------------
def init_params(key, c, num_heads, kernel_size):
    f = 4 * c
    ks = iter(jax.random.split(key, 16))

    def nrm(shape, scale=0.05):
        return scale * jax.random.normal(next(ks), shape, jnp.float32)

    wdt = jnp.bfloat16
    # Conv1d weight in torch layout [F, C, K] -> im2col layout [K*C, F]
    conv_w_torch = nrm((f, c, kernel_size))
    conv_w_im2col = jnp.transpose(conv_w_torch, (2, 1, 0)).reshape(kernel_size * c, f)

    return dict(
        # adaLN_modulation: SiLU -> Linear(C,C) -> Dropout(id) -> Linear(C,6C)
        ada_w1=nrm((c, c)).astype(wdt), ada_b1=nrm((c,)),
        ada_w2=nrm((c, 6 * c)).astype(wdt), ada_b2=nrm((6 * c,)),
        # LayerNorm1 / self-attention (bias=False projections)
        ln1_g=jnp.ones((c,), jnp.float32), ln1_b=jnp.zeros((c,), jnp.float32),
        qkv_w=nrm((c, 3 * c)).astype(wdt),        # fused q|k|v in-projection
        attn_out_w=nrm((c, c)).astype(wdt),       # out_proj
        # LayerNorm2 / FFN (Conv1d k=9 SAME -> *K^-0.5 -> gelu -> Linear 4C->C)
        ln2_g=jnp.ones((c,), jnp.float32), ln2_b=jnp.zeros((c,), jnp.float32),
        ffn1_w=conv_w_im2col.astype(wdt), ffn1_b=nrm((f,)),
        ffn2_w=nrm((f, c)).astype(wdt), ffn2_b=nrm((c,)),
    )


if __name__ == "__main__":
    T, B, C, H, K = 16, 2, 32, 2, 9
    key = jax.random.PRNGKey(0)
    k1, k2, k3 = jax.random.split(key, 3)

    x = jax.random.normal(k1, (T, B, C), jnp.float32)
    cond = jax.random.normal(k2, (T, B, C), jnp.float32)
    # pad the last 4 timesteps of batch element 1 to exercise the mask path
    encoder_padding_mask = jnp.zeros((B, T), jnp.bool_).at[1, T - 4:].set(True)

    params = init_params(k3, C, H, K)
    out = adaln_sa_layer_forward(params, x, cond, encoder_padding_mask,
                                 num_heads=H, kernel_size=K)
    jax.block_until_ready(out)
    assert out.shape == (T, B, C) and out.dtype == jnp.float32
    assert bool(jnp.all(jnp.isfinite(out)))
    print("KERNEL_OK")
</pallas_src>

<mosaic_0001>
module attributes {stable_mosaic.version = 11 : i64} {
  func.func @_adaln_kernel(%arg0: i32, %arg1: memref<16x32xf32, #tpu.memory_space<vmem>>, %arg2: memref<32x32xbf16, #tpu.memory_space<vmem>>, %arg3: memref<1x32xf32, #tpu.memory_space<vmem>>, %arg4: memref<32x192xbf16, #tpu.memory_space<vmem>>, %arg5: memref<1x192xf32, #tpu.memory_space<vmem>>, %arg6: memref<16x192xf32, #tpu.memory_space<vmem>>) attributes {dimension_semantics = [#tpu.dimension_semantics<parallel>], iteration_bounds = array<i64: 2>, scalar_prefetch = 0 : i64, scratch_operands = 0 : i64, tpu.core_type = #tpu.core_type<tc>, window_params = [{transform_indices = @transform_0, window_bounds = array<i64: 16, 32>}, {pipeline_mode = #tpu.pipeline_mode<synchronous>, transform_indices = @transform_1, window_bounds = array<i64: 32, 32>}, {pipeline_mode = #tpu.pipeline_mode<synchronous>, transform_indices = @transform_2, window_bounds = array<i64: 1, 32>}, {pipeline_mode = #tpu.pipeline_mode<synchronous>, transform_indices = @transform_3, window_bounds = array<i64: 32, 192>}, {pipeline_mode = #tpu.pipeline_mode<synchronous>, transform_indices = @transform_4, window_bounds = array<i64: 1, 192>}, {transform_indices = @transform_5, window_bounds = array<i64: 16, 192>}]} {
    %c0 = arith.constant 0 : index
    %c0_0 = arith.constant 0 : index
    %0 = vector.load %arg1[%c0, %c0_0] : memref<16x32xf32, #tpu.memory_space<vmem>>, vector<16x32xf32>
    %1 = arith.negf %0 : vector<16x32xf32>
    %2 = math.exp %1 : vector<16x32xf32>
    %cst = arith.constant 1.000000e+00 : f32
    %3 = vector.broadcast %cst : f32 to vector<16x32xf32>
    %4 = arith.addf %3, %2 : vector<16x32xf32>
    %5 = arith.divf %3, %4 : vector<16x32xf32>
    %6 = arith.mulf %0, %5 : vector<16x32xf32>
    %7 = arith.truncf %6 : vector<16x32xf32> to vector<16x32xbf16>
    %c0_1 = arith.constant 0 : index
    %c0_2 = arith.constant 0 : index
    %8 = vector.load %arg2[%c0_1, %c0_2] : memref<32x32xbf16, #tpu.memory_space<vmem>>, vector<32x32xbf16>
    %cst_3 = arith.constant dense<0.000000e+00> : vector<16x32xf32>
    %9 = tpu.matmul %7, %8, %cst_3 {dimension_numbers = #tpu.dot_dimension_numbers<[1], [0], [0], [1], [0, 0, 1, 1], [], []>} : vector<16x32xbf16>, vector<32x32xbf16>, vector<16x32xf32> -> vector<16x32xf32>
    %c0_4 = arith.constant 0 : index
    %c0_5 = arith.constant 0 : index
    %10 = vector.load %arg3[%c0_4, %c0_5] : memref<1x32xf32, #tpu.memory_space<vmem>>, vector<1x32xf32>
    %11 = vector.broadcast %10 : vector<1x32xf32> to vector<16x32xf32>
    %12 = arith.addf %9, %11 : vector<16x32xf32>
    %13 = arith.truncf %12 : vector<16x32xf32> to vector<16x32xbf16>
    %c0_6 = arith.constant 0 : index
    %c0_7 = arith.constant 0 : index
    %14 = vector.load %arg4[%c0_6, %c0_7] : memref<32x192xbf16, #tpu.memory_space<vmem>>, vector<32x192xbf16>
    %cst_8 = arith.constant dense<0.000000e+00> : vector<16x192xf32>
    %15 = tpu.matmul %13, %14, %cst_8 {dimension_numbers = #tpu.dot_dimension_numbers<[1], [0], [0], [1], [0, 0, 1, 1], [], []>} : vector<16x32xbf16>, vector<32x192xbf16>, vector<16x192xf32> -> vector<16x192xf32>
    %c0_9 = arith.constant 0 : index
    %c0_10 = arith.constant 0 : index
    %16 = vector.load %arg5[%c0_9, %c0_10] : memref<1x192xf32, #tpu.memory_space<vmem>>, vector<1x192xf32>
    %17 = vector.broadcast %16 : vector<1x192xf32> to vector<16x192xf32>
    %18 = arith.addf %15, %17 : vector<16x192xf32>
    %c0_11 = arith.constant 0 : index
    %c0_12 = arith.constant 0 : index
    %19 = vector.load %arg6[%c0_11, %c0_12] : memref<16x192xf32, #tpu.memory_space<vmem>>, vector<16x192xf32>
    tpu.vector_store %arg6[%c0_11, %c0_12], %18 {strides = array<i32>} : memref<16x192xf32, #tpu.memory_space<vmem>>, vector<16x192xf32>,
    return
  }
  func.func @transform_0(%arg0: i32) -> (i32, i32) {
    %c0_i32 = arith.constant 0 : i32
    %c0_i32_0 = arith.constant 0 : i32
    return %arg0, %c0_i32 : i32, i32
  }
  func.func @transform_1(%arg0: i32) -> (i32, i32) {
    %c0_i32 = arith.constant 0 : i32
    %c0_i32_0 = arith.constant 0 : i32
    %c0_i32_1 = arith.constant 0 : i32
    return %c0_i32, %c0_i32_0 : i32, i32
  }
  func.func @transform_2(%arg0: i32) -> (i32, i32) {
    %c0_i32 = arith.constant 0 : i32
    %c0_i32_0 = arith.constant 0 : i32
    %c0_i32_1 = arith.constant 0 : i32
    return %c0_i32, %c0_i32_0 : i32, i32
  }
  func.func @transform_3(%arg0: i32) -> (i32, i32) {
    %c0_i32 = arith.constant 0 : i32
    %c0_i32_0 = arith.constant 0 : i32
    %c0_i32_1 = arith.constant 0 : i32
    return %c0_i32, %c0_i32_0 : i32, i32
  }
  func.func @transform_4(%arg0: i32) -> (i32, i32) {
    %c0_i32 = arith.constant 0 : i32
    %c0_i32_0 = arith.constant 0 : i32
    %c0_i32_1 = arith.constant 0 : i32
    return %c0_i32, %c0_i32_0 : i32, i32
  }
  func.func @transform_5(%arg0: i32) -> (i32, i32) {
    %c0_i32 = arith.constant 0 : i32
    %c0_i32_0 = arith.constant 0 : i32
    return %arg0, %c0_i32 : i32, i32
  }
}

module attributes {stable_mosaic.version = 11 : i64} {
  func.func @_ln_mod_matmul_kernel(%arg0: i32, %arg1: memref<16x32xf32, #tpu.memory_space<vmem>>, %arg2: memref<1x32xf32, #tpu.memory_space<vmem>>, %arg3: memref<1x32xf32, #tpu.memory_space<vmem>>, %arg4: memref<16x192xf32, #tpu.memory_space<vmem>>, %arg5: memref<32x96xbf16, #tpu.memory_space<vmem>>, %arg6: memref<16x96xf32, #tpu.memory_space<vmem>>) attributes {dimension_semantics = [#tpu.dimension_semantics<parallel>], iteration_bounds = array<i64: 2>, scalar_prefetch = 0 : i64, scratch_operands = 0 : i64, tpu.core_type = #tpu.core_type<tc>, window_params = [{transform_indices = @transform_0, window_bounds = array<i64: 16, 32>}, {pipeline_mode = #tpu.pipeline_mode<synchronous>, transform_indices = @transform_1, window_bounds = array<i64: 1, 32>}, {pipeline_mode = #tpu.pipeline_mode<synchronous>, transform_indices = @transform_2, window_bounds = array<i64: 1, 32>}, {transform_indices = @transform_3, window_bounds = array<i64: 16, 192>}, {pipeline_mode = #tpu.pipeline_mode<synchronous>, transform_indices = @transform_4, window_bounds = array<i64: 32, 96>}, {transform_indices = @transform_5, window_bounds = array<i64: 16, 96>}]} {
    %c0 = arith.constant 0 : index
    %c0_0 = arith.constant 0 : index
    %0 = vector.load %arg1[%c0, %c0_0] : memref<16x32xf32, #tpu.memory_space<vmem>>, vector<16x32xf32>
    %cst = arith.constant dense<0.000000e+00> : vector<16xf32>
    %1 = vector.multi_reduction <add>, %0, %cst [1] : vector<16x32xf32> to vector<16xf32>
    %2 = vector.shape_cast %1 : vector<16xf32> to vector<16x1xf32>
    %cst_1 = arith.constant 3.200000e+01 : f32
    %3 = vector.broadcast %cst_1 : f32 to vector<16x1xf32>
    %4 = arith.divf %2, %3 : vector<16x1xf32>
    %5 = vector.broadcast %4 : vector<16x1xf32> to vector<16x32xf32>
    %6 = arith.subf %0, %5 : vector<16x32xf32>
    %7 = arith.mulf %6, %6 : vector<16x32xf32>
    %cst_2 = arith.constant dense<0.000000e+00> : vector<16xf32>
    %8 = vector.multi_reduction <add>, %7, %cst_2 [1] : vector<16x32xf32> to vector<16xf32>
    %9 = vector.shape_cast %8 : vector<16xf32> to vector<16x1xf32>
    %cst_3 = arith.constant 3.200000e+01 : f32
    %10 = vector.broadcast %cst_3 : f32 to vector<16x1xf32>
    %11 = arith.divf %9, %10 : vector<16x1xf32>
    %12 = vector.broadcast %4 : vector<16x1xf32> to vector<16x32xf32>
    %13 = arith.subf %0, %12 : vector<16x32xf32>
    %cst_4 = arith.constant 9.99999974E-6 : f32
    %14 = vector.broadcast %cst_4 : f32 to vector<16x1xf32>
    %15 = arith.addf %11, %14 : vector<16x1xf32>
    %16 = math.rsqrt %15 : vector<16x1xf32>
    %17 = vector.broadcast %16 : vector<16x1xf32> to vector<16x32xf32>
    %18 = arith.mulf %13, %17 : vector<16x32xf32>
    %c0_5 = arith.constant 0 : index
    %c0_6 = arith.constant 0 : index
    %19 = vector.load %arg2[%c0_5, %c0_6] : memref<1x32xf32, #tpu.memory_space<vmem>>, vector<1x32xf32>
    %20 = vector.broadcast %19 : vector<1x32xf32> to vector<16x32xf32>
    %21 = arith.mulf %18, %20 : vector<16x32xf32>
    %c0_7 = arith.constant 0 : index
    %c0_8 = arith.constant 0 : index
    %22 = vector.load %arg3[%c0_7, %c0_8] : memref<1x32xf32, #tpu.memory_space<vmem>>, vector<1x32xf32>
    %23 = vector.broadcast %22 : vector<1x32xf32> to vector<16x32xf32>
    %24 = arith.addf %21, %23 : vector<16x32xf32>
    %c0_9 = arith.constant 0 : index
    %c0_10 = arith.constant 0 : index
    %25 = vector.load %arg4[%c0_9, %c0_10] : memref<16x192xf32, #tpu.memory_space<vmem>>, vector<16x32xf32>
    %c0_11 = arith.constant 0 : index
    %c32 = arith.constant 32 : index
    %26 = vector.load %arg4[%c0_11, %c32] : memref<16x192xf32, #tpu.memory_space<vmem>>, vector<16x32xf32>
    %cst_12 = arith.constant 1.000000e+00 : f32
    %27 = vector.broadcast %cst_12 : f32 to vector<16x32xf32>
    %28 = arith.addf %27, %26 : vector<16x32xf32>
    %29 = arith.mulf %24, %28 : vector<16x32xf32>
    %30 = arith.addf %29, %25 : vector<16x32xf32>
    %31 = arith.truncf %30 : vector<16x32xf32> to vector<16x32xbf16>
    %c0_13 = arith.constant 0 : index
    %c0_14 = arith.constant 0 : index
    %32 = vector.load %arg5[%c0_13, %c0_14] : memref<32x96xbf16, #tpu.memory_space<vmem>>, vector<32x96xbf16>
    %cst_15 = arith.constant dense<0.000000e+00> : vector<16x96xf32>
    %33 = tpu.matmul %31, %32, %cst_15 {dimension_numbers = #tpu.dot_dimension_numbers<[1], [0], [0], [1], [0, 0, 1, 1], [], []>} : vector<16x32xbf16>, vector<32x96xbf16>, vector<16x96xf32> -> vector<16x96xf32>
    %c0_16 = arith.constant 0 : index
    %c0_17 = arith.constant 0 : index
    %34 = vector.load %arg6[%c0_16, %c0_17] : memref<16x96xf32, #tpu.memory_space<vmem>>, vector<16x96xf32>
    tpu.vector_store %arg6[%c0_16, %c0_17], %33 {strides = array<i32>} : memref<16x96xf32, #tpu.memory_space<vmem>>, vector<16x96xf32>,
    return
  }
  func.func @transform_0(%arg0: i32) -> (i32, i32) {
    %c0_i32 = arith.constant 0 : i32
    %c0_i32_0 = arith.constant 0 : i32
    return %arg0, %c0_i32 : i32, i32
  }
  func.func @transform_1(%arg0: i32) -> (i32, i32) {
    %c0_i32 = arith.constant 0 : i32
    %c0_i32_0 = arith.constant 0 : i32
    %c0_i32_1 = arith.constant 0 : i32
    return %c0_i32, %c0_i32_0 : i32, i32
  }
  func.func @transform_2(%arg0: i32) -> (i32, i32) {
    %c0_i32 = arith.constant 0 : i32
    %c0_i32_0 = arith.constant 0 : i32
    %c0_i32_1 = arith.constant 0 : i32
    return %c0_i32, %c0_i32_0 : i32, i32
  }
  func.func @transform_3(%arg0: i32) -> (i32, i32) {
    %c0_i32 = arith.constant 0 : i32
    %c0_i32_0 = arith.constant 0 : i32
    return %arg0, %c0_i32 : i32, i32
  }
  func.func @transform_4(%arg0: i32) -> (i32, i32) {
    %c0_i32 = arith.constant 0 : i32
    %c0_i32_0 = arith.constant 0 : i32
    %c0_i32_1 = arith.constant 0 : i32
    return %c0_i32, %c0_i32_0 : i32, i32
  }
  func.func @transform_5(%arg0: i32) -> (i32, i32) {
    %c0_i32 = arith.constant 0 : i32
    %c0_i32_0 = arith.constant 0 : i32
    return %arg0, %c0_i32 : i32, i32
  }
}

module attributes {stable_mosaic.version = 11 : i64} {
  func.func @_mha_kernel(%arg0: i32, %arg1: memref<1x16x96xf32, #tpu.memory_space<vmem>>, %arg2: memref<1x1x16xf32, #tpu.memory_space<vmem>>, %arg3: memref<1x16x32xf32, #tpu.memory_space<vmem>>) attributes {dimension_semantics = [#tpu.dimension_semantics<parallel>], iteration_bounds = array<i64: 2>, scalar_prefetch = 0 : i64, scratch_operands = 0 : i64, tpu.core_type = #tpu.core_type<tc>, window_params = [{transform_indices = @transform_0, window_bounds = array<i64: 1, 16, 96>}, {transform_indices = @transform_1, window_bounds = array<i64: 1, 1, 16>}, {transform_indices = @transform_2, window_bounds = array<i64: 1, 16, 32>}]} {
    %c0 = arith.constant 0 : index
    %c0_0 = arith.constant 0 : index
    %c0_1 = arith.constant 0 : index
    %0 = vector.load %arg1[%c0, %c0_0, %c0_1] : memref<1x16x96xf32, #tpu.memory_space<vmem>>, vector<1x16x96xf32>
    %1 = vector.shape_cast %0 : vector<1x16x96xf32> to vector<16x96xf32>
    %c0_2 = arith.constant 0 : index
    %c0_3 = arith.constant 0 : index
    %c0_4 = arith.constant 0 : index
    %2 = vector.load %arg2[%c0_2, %c0_3, %c0_4] : memref<1x1x16xf32, #tpu.memory_space<vmem>>, vector<1x1x16xf32>
    %3 = vector.shape_cast %2 : vector<1x1x16xf32> to vector<1x16xf32>
    %4 = vector.extract_strided_slice %1 {offsets = [0, 0], sizes = [16, 32], strides = [1, 1]} : vector<16x96xf32> to vector<16x32xf32>
    %5 = vector.extract_strided_slice %1 {offsets = [0, 32], sizes = [16, 32], strides = [1, 1]} : vector<16x96xf32> to vector<16x32xf32>
    %6 = vector.extract_strided_slice %1 {offsets = [0, 64], sizes = [16, 32], strides = [1, 1]} : vector<16x96xf32> to vector<16x32xf32>
    %7 = vector.extract_strided_slice %4 {offsets = [0, 0], sizes = [16, 16], strides = [1, 1]} : vector<16x32xf32> to vector<16x16xf32>
    %cst = arith.constant 2.500000e-01 : f32
    %8 = vector.broadcast %cst : f32 to vector<16x16xf32>
    %9 = arith.mulf %7, %8 : vector<16x16xf32>
    %10 = arith.truncf %9 : vector<16x16xf32> to vector<16x16xbf16>
    %11 = vector.extract_strided_slice %5 {offsets = [0, 0], sizes = [16, 16], strides = [1, 1]} : vector<16x32xf32> to vector<16x16xf32>
    %12 = arith.truncf %11 : vector<16x16xf32> to vector<16x16xbf16>
    %13 = vector.extract_strided_slice %6 {offsets = [0, 0], sizes = [16, 16], strides = [1, 1]} : vector<16x32xf32> to vector<16x16xf32>
    %14 = arith.truncf %13 : vector<16x16xf32> to vector<16x16xbf16>
    %cst_5 = arith.constant dense<0.000000e+00> : vector<16x16xf32>
    %15 = tpu.matmul %10, %12, %cst_5 {dimension_numbers = #tpu.dot_dimension_numbers<[1], [1], [0], [0], [0, 0, 1, 0], [], []>} : vector<16x16xbf16>, vector<16x16xbf16>, vector<16x16xf32> -> vector<16x16xf32>
    %cst_6 = arith.constant 0.000000e+00 : f32
    %16 = vector.broadcast %cst_6 : f32 to vector<1x16xf32>
    %17 = arith.cmpf ogt, %3, %16 : vector<1x16xf32>
    %cst_7 = arith.constant -1.000000e+30 : f32
    %18 = vector.shape_cast %17 : vector<1x16xi1> to vector<1x16xi1>
    %19 = vector.broadcast %18 : vector<1x16xi1> to vector<16x16xi1>
    %20 = vector.broadcast %cst_7 : f32 to vector<16x16xf32>
    %21 = arith.select %19, %20, %15 : vector<16x16xi1>, vector<16x16xf32>
    %cst_8 = arith.constant dense<0xFF800000> : vector<16xf32>
    %22 = vector.multi_reduction <maximumf>, %21, %cst_8 [1] : vector<16x16xf32> to vector<16xf32>
    %23 = vector.shape_cast %22 : vector<16xf32> to vector<16x1xf32>
    %24 = vector.broadcast %23 : vector<16x1xf32> to vector<16x16xf32>
    %25 = arith.subf %21, %24 : vector<16x16xf32>
    %26 = math.exp %25 : vector<16x16xf32>
    %cst_9 = arith.constant dense<0.000000e+00> : vector<16xf32>
    %27 = vector.multi_reduction <add>, %26, %cst_9 [1] : vector<16x16xf32> to vector<16xf32>
    %28 = vector.shape_cast %27 : vector<16xf32> to vector<16x1xf32>
    %29 = tpu.reciprocal %28 {approx = true} : vector<16x1xf32> -> vector<16x1xf32>
    %30 = vector.broadcast %29 : vector<16x1xf32> to vector<16x16xf32>
    %31 = arith.mulf %26, %30 : vector<16x16xf32>
    %32 = arith.truncf %31 : vector<16x16xf32> to vector<16x16xbf16>
    %cst_10 = arith.constant dense<0.000000e+00> : vector<16x16xf32>
    %33 = tpu.matmul %32, %14, %cst_10 {dimension_numbers = #tpu.dot_dimension_numbers<[1], [0], [0], [1], [0, 0, 1, 1], [], []>} : vector<16x16xbf16>, vector<16x16xbf16>, vector<16x16xf32> -> vector<16x16xf32>
    %34 = vector.extract_strided_slice %4 {offsets = [0, 16], sizes = [16, 16], strides = [1, 1]} : vector<16x32xf32> to vector<16x16xf32>
    %cst_11 = arith.constant 2.500000e-01 : f32
    %35 = vector.broadcast %cst_11 : f32 to vector<16x16xf32>
    %36 = arith.mulf %34, %35 : vector<16x16xf32>
    %37 = arith.truncf %36 : vector<16x16xf32> to vector<16x16xbf16>
    %38 = vector.extract_strided_slice %5 {offsets = [0, 16], sizes = [16, 16], strides = [1, 1]} : vector<16x32xf32> to vector<16x16xf32>
    %39 = arith.truncf %38 : vector<16x16xf32> to vector<16x16xbf16>
    %40 = vector.extract_strided_slice %6 {offsets = [0, 16], sizes = [16, 16], strides = [1, 1]} : vector<16x32xf32> to vector<16x16xf32>
    %41 = arith.truncf %40 : vector<16x16xf32> to vector<16x16xbf16>
    %cst_12 = arith.constant dense<0.000000e+00> : vector<16x16xf32>
    %42 = tpu.matmul %37, %39, %cst_12 {dimension_numbers = #tpu.dot_dimension_numbers<[1], [1], [0], [0], [0, 0, 1, 0], [], []>} : vector<16x16xbf16>, vector<16x16xbf16>, vector<16x16xf32> -> vector<16x16xf32>
    %cst_13 = arith.constant 0.000000e+00 : f32
    %43 = vector.broadcast %cst_13 : f32 to vector<1x16xf32>
    %44 = arith.cmpf ogt, %3, %43 : vector<1x16xf32>
    %cst_14 = arith.constant -1.000000e+30 : f32
    %45 = vector.shape_cast %44 : vector<1x16xi1> to vector<1x16xi1>
    %46 = vector.broadcast %45 : vector<1x16xi1> to vector<16x16xi1>
    %47 = vector.broadcast %cst_14 : f32 to vector<16x16xf32>
    %48 = arith.select %46, %47, %42 : vector<16x16xi1>, vector<16x16xf32>
    %cst_15 = arith.constant dense<0xFF800000> : vector<16xf32>
    %49 = vector.multi_reduction <maximumf>, %48, %cst_15 [1] : vector<16x16xf32> to vector<16xf32>
    %50 = vector.shape_cast %49 : vector<16xf32> to vector<16x1xf32>
    %51 = vector.broadcast %50 : vector<16x1xf32> to vector<16x16xf32>
    %52 = arith.subf %48, %51 : vector<16x16xf32>
    %53 = math.exp %52 : vector<16x16xf32>
    %cst_16 = arith.constant dense<0.000000e+00> : vector<16xf32>
    %54 = vector.multi_reduction <add>, %53, %cst_16 [1] : vector<16x16xf32> to vector<16xf32>
    %55 = vector.shape_cast %54 : vector<16xf32> to vector<16x1xf32>
    %56 = tpu.reciprocal %55 {approx = true} : vector<16x1xf32> -> vector<16x1xf32>
    %57 = vector.broadcast %56 : vector<16x1xf32> to vector<16x16xf32>
    %58 = arith.mulf %53, %57 : vector<16x16xf32>
    %59 = arith.truncf %58 : vector<16x16xf32> to vector<16x16xbf16>
    %cst_17 = arith.constant dense<0.000000e+00> : vector<16x16xf32>
    %60 = tpu.matmul %59, %41, %cst_17 {dimension_numbers = #tpu.dot_dimension_numbers<[1], [0], [0], [1], [0, 0, 1, 1], [], []>} : vector<16x16xbf16>, vector<16x16xbf16>, vector<16x16xf32> -> vector<16x16xf32>
    %61 = tpu.concatenate %33, %60 in 1 : vector<16x16xf32>, vector<16x16xf32> -> vector<16x32xf32>
    %c0_18 = arith.constant 0 : index
    %c0_19 = arith.constant 0 : index
    %c0_20 = arith.constant 0 : index
    %62 = vector.load %arg3[%c0_18, %c0_19, %c0_20] : memref<1x16x32xf32, #tpu.memory_space<vmem>>, vector<1x16x32xf32>
    %63 = vector.shape_cast %62 : vector<1x16x32xf32> to vector<16x32xf32>
    %64 = vector.shape_cast %61 : vector<16x32xf32> to vector<1x16x32xf32>
    tpu.vector_store %arg3[%c0_18, %c0_19, %c0_20], %64 {strides = array<i32>} : memref<1x16x32xf32, #tpu.memory_space<vmem>>, vector<1x16x32xf32>,
    return
  }
  func.func @transform_0(%arg0: i32) -> (i32, i32, i32) {
    %c0_i32 = arith.constant 0 : i32
    %c0_i32_0 = arith.constant 0 : i32
    %c0_i32_1 = arith.constant 0 : i32
    return %arg0, %c0_i32, %c0_i32_0 : i32, i32, i32
  }
  func.func @transform_1(%arg0: i32) -> (i32, i32, i32) {
    %c0_i32 = arith.constant 0 : i32
    %c0_i32_0 = arith.constant 0 : i32
    %c0_i32_1 = arith.constant 0 : i32
    return %arg0, %c0_i32, %c0_i32_0 : i32, i32, i32
  }
  func.func @transform_2(%arg0: i32) -> (i32, i32, i32) {
    %c0_i32 = arith.constant 0 : i32
    %c0_i32_0 = arith.constant 0 : i32
    %c0_i32_1 = arith.constant 0 : i32
    return %arg0, %c0_i32, %c0_i32_0 : i32, i32, i32
  }
}

module attributes {stable_mosaic.version = 11 : i64} {
  func.func @_proj_epilogue_kernel(%arg0: i32, %arg1: memref<16x32xf32, #tpu.memory_space<vmem>>, %arg2: memref<32x32xbf16, #tpu.memory_space<vmem>>, %arg3: memref<1x32xf32, #tpu.memory_space<vmem>>, %arg4: memref<16x192xf32, #tpu.memory_space<vmem>>, %arg5: memref<16x32xf32, #tpu.memory_space<vmem>>, %arg6: memref<16x1xf32, #tpu.memory_space<vmem>>, %arg7: memref<16x32xf32, #tpu.memory_space<vmem>>) attributes {dimension_semantics = [#tpu.dimension_semantics<parallel>], iteration_bounds = array<i64: 2>, scalar_prefetch = 0 : i64, scratch_operands = 0 : i64, tpu.core_type = #tpu.core_type<tc>, window_params = [{transform_indices = @transform_0, window_bounds = array<i64: 16, 32>}, {pipeline_mode = #tpu.pipeline_mode<synchronous>, transform_indices = @transform_1, window_bounds = array<i64: 32, 32>}, {pipeline_mode = #tpu.pipeline_mode<synchronous>, transform_indices = @transform_2, window_bounds = array<i64: 1, 32>}, {transform_indices = @transform_3, window_bounds = array<i64: 16, 192>}, {transform_indices = @transform_4, window_bounds = array<i64: 16, 32>}, {transform_indices = @transform_5, window_bounds = array<i64: 16, 1>}, {transform_indices = @transform_6, window_bounds = array<i64: 16, 32>}]} {
    %c0 = arith.constant 0 : index
    %c0_0 = arith.constant 0 : index
    %0 = vector.load %arg1[%c0, %c0_0] : memref<16x32xf32, #tpu.memory_space<vmem>>, vector<16x32xf32>
    %1 = arith.truncf %0 : vector<16x32xf32> to vector<16x32xbf16>
    %c0_1 = arith.constant 0 : index
    %c0_2 = arith.constant 0 : index
    %2 = vector.load %arg2[%c0_1, %c0_2] : memref<32x32xbf16, #tpu.memory_space<vmem>>, vector<32x32xbf16>
    %cst = arith.constant dense<0.000000e+00> : vector<16x32xf32>
    %3 = tpu.matmul %1, %2, %cst {dimension_numbers = #tpu.dot_dimension_numbers<[1], [0], [0], [1], [0, 0, 1, 1], [], []>} : vector<16x32xbf16>, vector<32x32xbf16>, vector<16x32xf32> -> vector<16x32xf32>
    %c0_3 = arith.constant 0 : index
    %c0_4 = arith.constant 0 : index
    %4 = vector.load %arg3[%c0_3, %c0_4] : memref<1x32xf32, #tpu.memory_space<vmem>>, vector<1x32xf32>
    %5 = vector.broadcast %4 : vector<1x32xf32> to vector<16x32xf32>
    %6 = arith.addf %3, %5 : vector<16x32xf32>
    %c0_5 = arith.constant 0 : index
    %c64 = arith.constant 64 : index
    %7 = vector.load %arg4[%c0_5, %c64] : memref<16x192xf32, #tpu.memory_space<vmem>>, vector<16x32xf32>
    %c0_6 = arith.constant 0 : index
    %c0_7 = arith.constant 0 : index
    %8 = vector.load %arg5[%c0_6, %c0_7] : memref<16x32xf32, #tpu.memory_space<vmem>>, vector<16x32xf32>
    %9 = arith.mulf %6, %7 : vector<16x32xf32>
    %10 = arith.addf %8, %9 : vector<16x32xf32>
    %c0_8 = arith.constant 0 : index
    %c0_9 = arith.constant 0 : index
    %11 = vector.load %arg6[%c0_8, %c0_9] : memref<16x1xf32, #tpu.memory_space<vmem>>, vector<16x1xf32>
    %12 = vector.broadcast %11 : vector<16x1xf32> to vector<16x32xf32>
    %13 = arith.mulf %10, %12 : vector<16x32xf32>
    %c0_10 = arith.constant 0 : index
    %c0_11 = arith.constant 0 : index
    %14 = vector.load %arg7[%c0_10, %c0_11] : memref<16x32xf32, #tpu.memory_space<vmem>>, vector<16x32xf32>
    tpu.vector_store %arg7[%c0_10, %c0_11], %13 {strides = array<i32>} : memref<16x32xf32, #tpu.memory_space<vmem>>, vector<16x32xf32>,
    return
  }
  func.func @transform_0(%arg0: i32) -> (i32, i32) {
    %c0_i32 = arith.constant 0 : i32
    %c0_i32_0 = arith.constant 0 : i32
    return %arg0, %c0_i32 : i32, i32
  }
  func.func @transform_1(%arg0: i32) -> (i32, i32) {
    %c0_i32 = arith.constant 0 : i32
    %c0_i32_0 = arith.constant 0 : i32
    %c0_i32_1 = arith.constant 0 : i32
    return %c0_i32, %c0_i32_0 : i32, i32
  }
  func.func @transform_2(%arg0: i32) -> (i32, i32) {
    %c0_i32 = arith.constant 0 : i32
    %c0_i32_0 = arith.constant 0 : i32
    %c0_i32_1 = arith.constant 0 : i32
    return %c0_i32, %c0_i32_0 : i32, i32
  }
  func.func @transform_3(%arg0: i32) -> (i32, i32) {
    %c0_i32 = arith.constant 0 : i32
    %c0_i32_0 = arith.constant 0 : i32
    return %arg0, %c0_i32 : i32, i32
  }
  func.func @transform_4(%arg0: i32) -> (i32, i32) {
    %c0_i32 = arith.constant 0 : i32
    %c0_i32_0 = arith.constant 0 : i32
    return %arg0, %c0_i32 : i32, i32
  }
  func.func @transform_5(%arg0: i32) -> (i32, i32) {
    %c0_i32 = arith.constant 0 : i32
    %c0_i32_0 = arith.constant 0 : i32
    return %arg0, %c0_i32 : i32, i32
  }
  func.func @transform_6(%arg0: i32) -> (i32, i32) {
    %c0_i32 = arith.constant 0 : i32
    %c0_i32_0 = arith.constant 0 : i32
    return %arg0, %c0_i32 : i32, i32
  }
}

module attributes {stable_mosaic.version = 11 : i64} {
  func.func @_proj_epilogue_kernel(%arg0: i32, %arg1: memref<16x128xf32, #tpu.memory_space<vmem>>, %arg2: memref<128x32xbf16, #tpu.memory_space<vmem>>, %arg3: memref<1x32xf32, #tpu.memory_space<vmem>>, %arg4: memref<16x192xf32, #tpu.memory_space<vmem>>, %arg5: memref<16x32xf32, #tpu.memory_space<vmem>>, %arg6: memref<16x1xf32, #tpu.memory_space<vmem>>, %arg7: memref<16x32xf32, #tpu.memory_space<vmem>>) attributes {dimension_semantics = [#tpu.dimension_semantics<parallel>], iteration_bounds = array<i64: 2>, scalar_prefetch = 0 : i64, scratch_operands = 0 : i64, tpu.core_type = #tpu.core_type<tc>, window_params = [{transform_indices = @transform_0, window_bounds = array<i64: 16, 128>}, {pipeline_mode = #tpu.pipeline_mode<synchronous>, transform_indices = @transform_1, window_bounds = array<i64: 128, 32>}, {pipeline_mode = #tpu.pipeline_mode<synchronous>, transform_indices = @transform_2, window_bounds = array<i64: 1, 32>}, {transform_indices = @transform_3, window_bounds = array<i64: 16, 192>}, {transform_indices = @transform_4, window_bounds = array<i64: 16, 32>}, {transform_indices = @transform_5, window_bounds = array<i64: 16, 1>}, {transform_indices = @transform_6, window_bounds = array<i64: 16, 32>}]} {
    %c0 = arith.constant 0 : index
    %c0_0 = arith.constant 0 : index
    %0 = vector.load %arg1[%c0, %c0_0] : memref<16x128xf32, #tpu.memory_space<vmem>>, vector<16x128xf32>
    %1 = arith.truncf %0 : vector<16x128xf32> to vector<16x128xbf16>
    %c0_1 = arith.constant 0 : index
    %c0_2 = arith.constant 0 : index
    %2 = vector.load %arg2[%c0_1, %c0_2] : memref<128x32xbf16, #tpu.memory_space<vmem>>, vector<128x32xbf16>
    %cst = arith.constant dense<0.000000e+00> : vector<16x32xf32>
    %3 = tpu.matmul %1, %2, %cst {dimension_numbers = #tpu.dot_dimension_numbers<[1], [0], [0], [1], [0, 0, 1, 1], [], []>} : vector<16x128xbf16>, vector<128x32xbf16>, vector<16x32xf32> -> vector<16x32xf32>
    %c0_3 = arith.constant 0 : index
    %c0_4 = arith.constant 0 : index
    %4 = vector.load %arg3[%c0_3, %c0_4] : memref<1x32xf32, #tpu.memory_space<vmem>>, vector<1x32xf32>
    %5 = vector.broadcast %4 : vector<1x32xf32> to vector<16x32xf32>
    %6 = arith.addf %3, %5 : vector<16x32xf32>
    %c0_5 = arith.constant 0 : index
    %c160 = arith.constant 160 : index
    %7 = vector.load %arg4[%c0_5, %c160] : memref<16x192xf32, #tpu.memory_space<vmem>>, vector<16x32xf32>
    %c0_6 = arith.constant 0 : index
    %c0_7 = arith.constant 0 : index
    %8 = vector.load %arg5[%c0_6, %c0_7] : memref<16x32xf32, #tpu.memory_space<vmem>>, vector<16x32xf32>
    %9 = arith.mulf %6, %7 : vector<16x32xf32>
    %10 = arith.addf %8, %9 : vector<16x32xf32>
    %c0_8 = arith.constant 0 : index
    %c0_9 = arith.constant 0 : index
    %11 = vector.load %arg6[%c0_8, %c0_9] : memref<16x1xf32, #tpu.memory_space<vmem>>, vector<16x1xf32>
    %12 = vector.broadcast %11 : vector<16x1xf32> to vector<16x32xf32>
    %13 = arith.mulf %10, %12 : vector<16x32xf32>
    %c0_10 = arith.constant 0 : index
    %c0_11 = arith.constant 0 : index
    %14 = vector.load %arg7[%c0_10, %c0_11] : memref<16x32xf32, #tpu.memory_space<vmem>>, vector<16x32xf32>
    tpu.vector_store %arg7[%c0_10, %c0_11], %13 {strides = array<i32>} : memref<16x32xf32, #tpu.memory_space<vmem>>, vector<16x32xf32>,
    return
  }
  func.func @transform_0(%arg0: i32) -> (i32, i32) {
    %c0_i32 = arith.constant 0 : i32
    %c0_i32_0 = arith.constant 0 : i32
    return %arg0, %c0_i32 : i32, i32
  }
  func.func @transform_1(%arg0: i32) -> (i32, i32) {
    %c0_i32 = arith.constant 0 : i32
    %c0_i32_0 = arith.constant 0 : i32
    %c0_i32_1 = arith.constant 0 : i32
    return %c0_i32, %c0_i32_0 : i32, i32
  }
  func.func @transform_2(%arg0: i32) -> (i32, i32) {
    %c0_i32 = arith.constant 0 : i32
    %c0_i32_0 = arith.constant 0 : i32
    %c0_i32_1 = arith.constant 0 : i32
    return %c0_i32, %c0_i32_0 : i32, i32
  }
  func.func @transform_3(%arg0: i32) -> (i32, i32) {
    %c0_i32 = arith.constant 0 : i32
    %c0_i32_0 = arith.constant 0 : i32
    return %arg0, %c0_i32 : i32, i32
  }
  func.func @transform_4(%arg0: i32) -> (i32, i32) {
    %c0_i32 = arith.constant 0 : i32
    %c0_i32_0 = arith.constant 0 : i32
    return %arg0, %c0_i32 : i32, i32
  }
  func.func @transform_5(%arg0: i32) -> (i32, i32) {
    %c0_i32 = arith.constant 0 : i32
    %c0_i32_0 = arith.constant 0 : i32
    return %arg0, %c0_i32 : i32, i32
  }
  func.func @transform_6(%arg0: i32) -> (i32, i32) {
    %c0_i32 = arith.constant 0 : i32
    %c0_i32_0 = arith.constant 0 : i32
    return %arg0, %c0_i32 : i32, i32
  }
}

module attributes {stable_mosaic.version = 11 : i64} {
  func.func @_ln_mod_conv_kernel(%arg0: i32, %arg1: memref<1x16x32xf32, #tpu.memory_space<vmem>>, %arg2: memref<1x32xf32, #tpu.memory_space<vmem>>, %arg3: memref<1x32xf32, #tpu.memory_space<vmem>>, %arg4: memref<1x16x192xf32, #tpu.memory_space<vmem>>, %arg5: memref<288x128xbf16, #tpu.memory_space<vmem>>, %arg6: memref<1x128xf32, #tpu.memory_space<vmem>>, %arg7: memref<1x16x128xf32, #tpu.memory_space<vmem>>) attributes {dimension_semantics = [#tpu.dimension_semantics<parallel>], iteration_bounds = array<i64: 2>, scalar_prefetch = 0 : i64, scratch_operands = 0 : i64, tpu.core_type = #tpu.core_type<tc>, window_params = [{transform_indices = @transform_0, window_bounds = array<i64: 1, 16, 32>}, {pipeline_mode = #tpu.pipeline_mode<synchronous>, transform_indices = @transform_1, window_bounds = array<i64: 1, 32>}, {pipeline_mode = #tpu.pipeline_mode<synchronous>, transform_indices = @transform_2, window_bounds = array<i64: 1, 32>}, {transform_indices = @transform_3, window_bounds = array<i64: 1, 16, 192>}, {pipeline_mode = #tpu.pipeline_mode<synchronous>, transform_indices = @transform_4, window_bounds = array<i64: 288, 128>}, {pipeline_mode = #tpu.pipeline_mode<synchronous>, transform_indices = @transform_5, window_bounds = array<i64: 1, 128>}, {transform_indices = @transform_6, window_bounds = array<i64: 1, 16, 128>}]} {
    %c0 = arith.constant 0 : index
    %c0_0 = arith.constant 0 : index
    %c0_1 = arith.constant 0 : index
    %0 = vector.load %arg1[%c0, %c0_0, %c0_1] : memref<1x16x32xf32, #tpu.memory_space<vmem>>, vector<1x16x32xf32>
    %1 = vector.shape_cast %0 : vector<1x16x32xf32> to vector<16x32xf32>
    %cst = arith.constant dense<0.000000e+00> : vector<16xf32>
    %2 = vector.multi_reduction <add>, %1, %cst [1] : vector<16x32xf32> to vector<16xf32>
    %3 = vector.shape_cast %2 : vector<16xf32> to vector<16x1xf32>
    %cst_2 = arith.constant 3.200000e+01 : f32
    %4 = vector.broadcast %cst_2 : f32 to vector<16x1xf32>
    %5 = arith.divf %3, %4 : vector<16x1xf32>
    %6 = vector.broadcast %5 : vector<16x1xf32> to vector<16x32xf32>
    %7 = arith.subf %1, %6 : vector<16x32xf32>
    %8 = arith.mulf %7, %7 : vector<16x32xf32>
    %cst_3 = arith.constant dense<0.000000e+00> : vector<16xf32>
    %9 = vector.multi_reduction <add>, %8, %cst_3 [1] : vector<16x32xf32> to vector<16xf32>
    %10 = vector.shape_cast %9 : vector<16xf32> to vector<16x1xf32>
    %cst_4 = arith.constant 3.200000e+01 : f32
    %11 = vector.broadcast %cst_4 : f32 to vector<16x1xf32>
    %12 = arith.divf %10, %11 : vector<16x1xf32>
    %13 = vector.broadcast %5 : vector<16x1xf32> to vector<16x32xf32>
    %14 = arith.subf %1, %13 : vector<16x32xf32>
    %cst_5 = arith.constant 9.99999974E-6 : f32
    %15 = vector.broadcast %cst_5 : f32 to vector<16x1xf32>
    %16 = arith.addf %12, %15 : vector<16x1xf32>
    %17 = math.rsqrt %16 : vector<16x1xf32>
    %18 = vector.broadcast %17 : vector<16x1xf32> to vector<16x32xf32>
    %19 = arith.mulf %14, %18 : vector<16x32xf32>
    %c0_6 = arith.constant 0 : index
    %c0_7 = arith.constant 0 : index
    %20 = vector.load %arg2[%c0_6, %c0_7] : memref<1x32xf32, #tpu.memory_space<vmem>>, vector<1x32xf32>
    %21 = vector.broadcast %20 : vector<1x32xf32> to vector<16x32xf32>
    %22 = arith.mulf %19, %21 : vector<16x32xf32>
    %c0_8 = arith.constant 0 : index
    %c0_9 = arith.constant 0 : index
    %23 = vector.load %arg3[%c0_8, %c0_9] : memref<1x32xf32, #tpu.memory_space<vmem>>, vector<1x32xf32>
    %24 = vector.broadcast %23 : vector<1x32xf32> to vector<16x32xf32>
    %25 = arith.addf %22, %24 : vector<16x32xf32>
    %c0_10 = arith.constant 0 : index
    %c0_11 = arith.constant 0 : index
    %c0_12 = arith.constant 0 : index
    %26 = vector.load %arg4[%c0_10, %c0_11, %c0_12] : memref<1x16x192xf32, #tpu.memory_space<vmem>>, vector<1x16x192xf32>
    %27 = vector.shape_cast %26 : vector<1x16x192xf32> to vector<16x192xf32>
    %28 = vector.extract_strided_slice %27 {offsets = [0, 96], sizes = [16, 32], strides = [1, 1]} : vector<16x192xf32> to vector<16x32xf32>
    %29 = vector.extract_strided_slice %27 {offsets = [0, 128], sizes = [16, 32], strides = [1, 1]} : vector<16x192xf32> to vector<16x32xf32>
    %cst_13 = arith.constant 1.000000e+00 : f32
    %30 = vector.broadcast %cst_13 : f32 to vector<16x32xf32>
    %31 = arith.addf %30, %29 : vector<16x32xf32>
    %32 = arith.mulf %25, %31 : vector<16x32xf32>
    %33 = arith.addf %32, %28 : vector<16x32xf32>
    %cst_14 = arith.constant 0.000000e+00 : f32
    %34 = vector.broadcast %cst_14 : f32 to vector<4x32xf32>
    %35 = tpu.concatenate %34, %33, %34 in 0 : vector<4x32xf32>, vector<16x32xf32>, vector<4x32xf32> -> vector<24x32xf32>
    %36 = vector.extract_strided_slice %35 {offsets = [0, 0], sizes = [16, 32], strides = [1, 1]} : vector<24x32xf32> to vector<16x32xf32>
    %37 = vector.extract_strided_slice %35 {offsets = [1, 0], sizes = [16, 32], strides = [1, 1]} : vector<24x32xf32> to vector<16x32xf32>
    %38 = vector.extract_strided_slice %35 {offsets = [2, 0], sizes = [16, 32], strides = [1, 1]} : vector<24x32xf32> to vector<16x32xf32>
    %39 = vector.extract_strided_slice %35 {offsets = [3, 0], sizes = [16, 32], strides = [1, 1]} : vector<24x32xf32> to vector<16x32xf32>
    %40 = vector.extract_strided_slice %35 {offsets = [4, 0], sizes = [16, 32], strides = [1, 1]} : vector<24x32xf32> to vector<16x32xf32>
    %41 = vector.extract_strided_slice %35 {offsets = [5, 0], sizes = [16, 32], strides = [1, 1]} : vector<24x32xf32> to vector<16x32xf32>
    %42 = vector.extract_strided_slice %35 {offsets = [6, 0], sizes = [16, 32], strides = [1, 1]} : vector<24x32xf32> to vector<16x32xf32>
    %43 = vector.extract_strided_slice %35 {offsets = [7, 0], sizes = [16, 32], strides = [1, 1]} : vector<24x32xf32> to vector<16x32xf32>
    %44 = vector.extract_strided_slice %35 {offsets = [8, 0], sizes = [16, 32], strides = [1, 1]} : vector<24x32xf32> to vector<16x32xf32>
    %45 = tpu.concatenate %36, %37, %38, %39, %40, %41, %42, %43, %44 in 1 : vector<16x32xf32>, vector<16x32xf32>, vector<16x32xf32>, vector<16x32xf32>, vector<16x32xf32>, vector<16x32xf32>, vector<16x32xf32>, vector<16x32xf32>, vector<16x32xf32> -> vector<16x288xf32>
    %46 = arith.truncf %45 : vector<16x288xf32> to vector<16x288xbf16>
    %c0_15 = arith.constant 0 : index
    %c0_16 = arith.constant 0 : index
    %47 = vector.load %arg5[%c0_15, %c0_16] : memref<288x128xbf16, #tpu.memory_space<vmem>>, vector<288x128xbf16>
    %cst_17 = arith.constant dense<0.000000e+00> : vector<16x128xf32>
    %48 = tpu.matmul %46, %47, %cst_17 {dimension_numbers = #tpu.dot_dimension_numbers<[1], [0], [0], [1], [0, 0, 1, 1], [], []>} : vector<16x288xbf16>, vector<288x128xbf16>, vector<16x128xf32> -> vector<16x128xf32>
    %c0_18 = arith.constant 0 : index
    %c0_19 = arith.constant 0 : index
    %49 = vector.load %arg6[%c0_18, %c0_19] : memref<1x128xf32, #tpu.memory_space<vmem>>, vector<1x128xf32>
    %50 = vector.broadcast %49 : vector<1x128xf32> to vector<16x128xf32>
    %51 = arith.addf %48, %50 : vector<16x128xf32>
    %cst_20 = arith.constant 0.333333343 : f32
    %52 = vector.broadcast %cst_20 : f32 to vector<16x128xf32>
    %53 = arith.mulf %51, %52 : vector<16x128xf32>
    %cst_21 = arith.constant 5.000000e-01 : f32
    %54 = vector.broadcast %cst_21 : f32 to vector<16x128xf32>
    %55 = arith.mulf %54, %53 : vector<16x128xf32>
    %cst_22 = arith.constant 4.471500e-02 : f32
    %56 = vector.broadcast %cst_22 : f32 to vector<16x128xf32>
    %57 = arith.mulf %56, %53 : vector<16x128xf32>
    %58 = arith.mulf %57, %53 : vector<16x128xf32>
    %59 = arith.mulf %58, %53 : vector<16x128xf32>
    %60 = arith.addf %53, %59 : vector<16x128xf32>
    %cst_23 = arith.constant 0.797884583 : f32
    %61 = vector.broadcast %cst_23 : f32 to vector<16x128xf32>
    %62 = arith.mulf %61, %60 : vector<16x128xf32>
    %63 = math.tanh %62 : vector<16x128xf32>
    %cst_24 = arith.constant 1.000000e+00 : f32
    %64 = vector.broadcast %cst_24 : f32 to vector<16x128xf32>
    %65 = arith.addf %64, %63 : vector<16x128xf32>
    %66 = arith.mulf %55, %65 : vector<16x128xf32>
    %c0_25 = arith.constant 0 : index
    %c0_26 = arith.constant 0 : index
    %c0_27 = arith.constant 0 : index
    %67 = vector.load %arg7[%c0_25, %c0_26, %c0_27] : memref<1x16x128xf32, #tpu.memory_space<vmem>>, vector<1x16x128xf32>
    %68 = vector.shape_cast %67 : vector<1x16x128xf32> to vector<16x128xf32>
    %69 = vector.shape_cast %66 : vector<16x128xf32> to vector<1x16x128xf32>
    tpu.vector_store %arg7[%c0_25, %c0_26, %c0_27], %69 {strides = array<i32>} : memref<1x16x128xf32, #tpu.memory_space<vmem>>, vector<1x16x128xf32>,
    return
  }
  func.func @transform_0(%arg0: i32) -> (i32, i32, i32) {
    %c0_i32 = arith.constant 0 : i32
    %c0_i32_0 = arith.constant 0 : i32
    %c0_i32_1 = arith.constant 0 : i32
    return %arg0, %c0_i32, %c0_i32_0 : i32, i32, i32
  }
  func.func @transform_1(%arg0: i32) -> (i32, i32) {
    %c0_i32 = arith.constant 0 : i32
    %c0_i32_0 = arith.constant 0 : i32
    %c0_i32_1 = arith.constant 0 : i32
    return %c0_i32, %c0_i32_0 : i32, i32
  }
  func.func @transform_2(%arg0: i32) -> (i32, i32) {
    %c0_i32 = arith.constant 0 : i32
    %c0_i32_0 = arith.constant 0 : i32
    %c0_i32_1 = arith.constant 0 : i32
    return %c0_i32, %c0_i32_0 : i32, i32
  }
  func.func @transform_3(%arg0: i32) -> (i32, i32, i32) {
    %c0_i32 = arith.constant 0 : i32
    %c0_i32_0 = arith.constant 0 : i32
    %c0_i32_1 = arith.constant 0 : i32
    return %arg0, %c0_i32, %c0_i32_0 : i32, i32, i32
  }
  func.func @transform_4(%arg0: i32) -> (i32, i32) {
    %c0_i32 = arith.constant 0 : i32
    %c0_i32_0 = arith.constant 0 : i32
    %c0_i32_1 = arith.constant 0 : i32
    return %c0_i32, %c0_i32_0 : i32, i32
  }
  func.func @transform_5(%arg0: i32) -> (i32, i32) {
    %c0_i32 = arith.constant 0 : i32
    %c0_i32_0 = arith.constant 0 : i32
    %c0_i32_1 = arith.constant 0 : i32
    return %c0_i32, %c0_i32_0 : i32, i32
  }
  func.func @transform_6(%arg0: i32) -> (i32, i32, i32) {
    %c0_i32 = arith.constant 0 : i32
    %c0_i32_0 = arith.constant 0 : i32
    %c0_i32_1 = arith.constant 0 : i32
    return %arg0, %c0_i32, %c0_i32_0 : i32, i32, i32
  }
}

</mosaic_0001>

<bundles_post_ra>
// kernel: adaln_sa_layer_forward.7
= control target key start
LH: loop header
LB: loop body
LE: loop exit
PB: predicated region body
PF: predicated region fallthrough
CT: control target
= control target key end

     0   :  { %s539_s18 = smov 0   ;;  %s584_s0 = inlined_call_operand.vmem [shape: f32[32,32], index: 0, kind: input, shape index: {}]   ;;  %s585_s1 = inlined_call_operand.vmem [shape: f32[1,32], index: 1, kind: input, shape index: {}]   ;;  %s586_s2 = inlined_call_operand.vmem [shape: f32[1,32], index: 2, kind: input, shape index: {}]   ;;  %s587_s3 = inlined_call_operand.vmem [shape: f32[32,192], index: 3, kind: input, shape index: {}]   ;;  %s588_s4 = inlined_call_operand.vmem [shape: bf16[32,96], index: 4, kind: input, shape index: {}]   ;;  %s589_s5 = inlined_call_operand.vmem [shape: f32[32,96], index: 5, kind: output, shape index: {}]  }
   0x1 LB: > { %s450_s19 = sadd.s32 4294967295, %s504_s18   ;;  %p454_p0 = scmp.ge.s32.totalorder %s504_s18, 1  ;;  %s504_s18 = sphi %s539_s18, %s15_s18  }
   0x2   : > { %p200_p1 = scmp.lt.s32.totalorder %s504_s18, 3 }
   0x4   : > { %p201_p2 = pnand %p454_p0, %p200_p1 }
   0x5   : > { %s455_s20 = sshll.u32 (!%p201_p2), %s450_s19, 1  ;;  %s506_s29 = smov (!%p201_p2), 96  }
   0x6   : > { %204 = sbr.rel (%p201_p2) target bundleno = 532 (0x214), region = 40  ;;  %p235_p3 = scmp.lt.s32.totalorder (!%p201_p2), %s455_s20, 3 }
   0xb   : > { %s591_s20 = smov (!%p235_p3, %s455_s20), 3  ;;  %vm256_vm0 = vcmask 261120   ;;  %v492_v18 = vld [vmem:[%s588_s4 + $0x8] sm:$0xff]   ;;  %v507_v19 = vmov 0.0   ;;  %v493_v20 = vld [vmem:[%s588_s4] sm:$0xff]   ;;  %vm508_vm1 = vmmov 0  }
   0xc   : > { %s456_s21 = sshll.u32 %s591_s20, 3  ;;  %s469_s25 = sshll.u32 %s591_s20, 4  ;;  %473 = vmatprep.subr.bf16.mxu0 %v507_v19  ;;  %477 = vmatprep.mubr.msk.bf16.mxu0 %vm508_vm1, %v507_v19  ;;  %v462_v28 = vld [vmem:[%s585_s1] ss:$0 sm:$0xff]  ;;  %vm379_vm2 = vcmask 785408  }
   0xd   : > { %s238_s24 = scalar_lea.vmem %s584_s0, %s456_s21  ;;  %s245_s28 = scalar_lea.vmem %s587_s3, %s469_s25  ;;  %474 = vmatpush3.bf16.msra.mxu0 %v492_v18  ;;  %v463_v30 = vld [vmem:[%s586_s2] ss:$0 sm:$0xff] }
   0xe   : > { %v254_v0 = vld [vmem:[%s238_s24] sm:$0xff]  ;;  %v255_v1 = vld [vmem:[%s238_s24 + $0x8] sm:$0xff]  ;;  %v303_v16 = vld [vmem:[%s245_s28 + $0x10] sm:$0xff]  ;;  %475 = vmatprep.subr.bf16.mxu0 %v507_v19  ;;  %s251_s15 = scalar_lea.vmem %s589_s5, %s456_s21 }
   0xf   : > { %v257_v2 = vsel %vm256_vm0, %v254_v0, 0.0  ;;  %v260_v3 = vsel %vm256_vm0, %v255_v1, 0.0  ;;  %v302_v4 = vld [vmem:[%s245_s28] sm:$0xff]  ;;  %v305_v17 = vadd.f32 1.0, %v303_v16 }
  0x10   : > { %258 = vadd.xlane.f32.xlu0 %v257_v2  ;;  %v304_v5 = vadd.f32 1.0, %v302_v4 }
  0x11   : > { %476 = vmatpush3.bf16.msra.mxu0 %v493_v20 }
  0x14   : > { %261 = vadd.xlane.f32.xlu0 %v260_v3 }
  0x2a   : > { %308 = vrot.lane.b32.xlu0 %v304_v5, %s506_s29 }
  0x99   : > { %v259_v6 = vpop.xlane.xlu0 %258 }
  0x9a   : > { %v264_v7 = vmul.f32 0.03125, %v259_v6 }
  0x9c   : > { %v266_v8 = vsub.f32 %v254_v0, %v264_v7 }
  0x9d   : > { %v262_v9 = vpop.xlane.xlu0 %261 }
  0x9e   : > { %v265_v10 = vmul.f32 0.03125, %v262_v9  ;;  %v268_v11 = vmul.f32 %v266_v8, %v266_v8 }
  0xa0   : > { %v267_v12 = vsub.f32 %v255_v1, %v265_v10  ;;  %v270_v13 = vsel %vm256_vm0, %v268_v11, 0.0 }
  0xa1   : > { %271 = vadd.xlane.f32.xlu1 %v270_v13  ;;  %v309_v35 = vpop.permute.xlu0 %308 }
  0xa2   : > { %v269_v14 = vmul.f32 %v267_v12, %v267_v12 }
  0xa4   : > { %v273_v15 = vsel %vm256_vm0, %v269_v14, 0.0 }
  0xa5   : > { %274 = vadd.xlane.f32.xlu1 %v273_v15 }
  0xb6   : > { %310 = vrot.lane.b32.xlu1 %v305_v17, %s506_s29 }
 0x12a   : > { %v272_v21 = vpop.xlane.xlu1 %271 }
 0x12b   : > { %v276_v22 = vmul.f32 0.03125, %v272_v21 }
 0x12d   : > { %v278_v23 = vadd.f32 1e-05, %v276_v22 }
 0x12e   : > { %v275_v24 = vpop.xlane.xlu1 %274 }
 0x12f   : > { %494 = vrsqrt.f32 %v278_v23  ;;  %v277_v25 = vmul.f32 0.03125, %v275_v24 }
 0x131   : > { %v279_v26 = vadd.f32 1e-05, %v277_v25 }
 0x132   : > { %v311_v37 = vpop.permute.xlu1 %310 }
 0x133   : > { %496 = vrsqrt.f32 %v279_v26 }
 0x13c   : > { %v495_v27 = vpop.eup %494 }
 0x13d   : > { %v282_v29 = vmul.f32 %v495_v27, %v266_v8 }
 0x13f   : > { %v291_v31 = vmul.f32 %v462_v28, %v282_v29 }
 0x140   : > { %v497_v32 = vpop.eup %496 }
 0x141   : > { %v300_v33 = vadd.f32 %v463_v30, %v291_v31  ;;  %v283_v34 = vmul.f32 %v497_v32, %v267_v12 }
 0x143   : > { %v292_v36 = vmul.f32 %v462_v28, %v283_v34  ;;  %v314_v38 = vmul.f32 %v309_v35, %v300_v33 }
 0x145   : > { %v301_v39 = vadd.f32 %v463_v30, %v292_v36  ;;  %v316_v41 = vadd.f32 %v314_v38, %v302_v4 }
 0x147   : > { %v315_v40 = vmul.f32 %v311_v37, %v301_v39 }
 0x149   : > { %v317_v42 = vadd.f32 %v315_v40, %v303_v16 }
 0x14b   : > { %v318_v43 = vpack.c.bf16 %v317_v42, %v316_v41 }
 0x14d   : > { %478 = vmatmul.mubr.msk.bf16.vlgmr.msra.gmra.mxu0 %vm256_vm0, %v318_v43 }
 0x20d   : > { %v372_v44 = vpop.f32.mrf.mxu0 }
 0x20e   : > { %380 = vst.msk [vmem:[%s251_s15] sm:$0xff] %vm379_vm2, %v372_v44 }
 0x20f   : > { %v479_v45 = vpop.f32.mrf.mxu0 }
 0x211   : > { %v375_v46 = vpop.f32.mrf.mxu0 }
 0x212   : > { %381 = vst.msk [vmem:[%s251_s15 + $0x8] sm:$0xff] %vm379_vm2, %v375_v46 }
 0x213   : > { %v480_v47 = vpop.f32.mrf.mxu0 }
 0x214 PF: > { %s15_s18 = sadd.s32 1, %s504_s18  }
 0x215   : > { %p12_p4 = scmp.ge.s32.totalorder %s15_s18, 4  }
 0x217   :  { %14 = sbr.rel (!%p12_p4) target bundleno = 1 (0x1), region = 73 }

// kernel: adaln_sa_layer_forward.6
= control target key start
LH: loop header
LB: loop body
LE: loop exit
PB: predicated region body
PF: predicated region fallthrough
CT: control target
= control target key end

     0   :  { %s565_s18 = smov 0   ;;  %s612_s0 = inlined_call_operand.vmem [shape: f32[32,32], index: 0, kind: input, shape index: {}]   ;;  %s613_s1 = inlined_call_operand.vmem [shape: bf16[32,32], index: 1, kind: input, shape index: {}]   ;;  %s614_s2 = inlined_call_operand.vmem [shape: f32[1,32], index: 2, kind: input, shape index: {}]   ;;  %s615_s3 = inlined_call_operand.vmem [shape: bf16[32,192], index: 3, kind: input, shape index: {}]   ;;  %s616_s4 = inlined_call_operand.vmem [shape: f32[1,192], index: 4, kind: input, shape index: {}]   ;;  %s617_s5 = inlined_call_operand.vmem [shape: f32[32,192], index: 5, kind: output, shape index: {}]  }
   0x1 LB: > { %s462_s19 = sadd.s32 4294967295, %s530_s18   ;;  %p466_p0 = scmp.ge.s32.totalorder %s530_s18, 1  ;;  %s530_s18 = sphi %s565_s18, %s15_s18  }
   0x2   : > { %p188_p1 = scmp.lt.s32.totalorder %s530_s18, 3 }
   0x4   : > { %p189_p2 = pnand %p466_p0, %p188_p1 }
   0x5   : > { %s467_s24 = sshll.u32 (!%p189_p2), %s462_s19, 1 }
   0x6   : > { %192 = sbr.rel (%p189_p2) target bundleno = 455 (0x1c7), region = 40  ;;  %p218_p3 = scmp.lt.s32.totalorder (!%p189_p2), %s467_s24, 3 }
   0xb   : > { %v508_v0 = vld [vmem:[%s613_s1 + $0x8] sm:$0xff]   ;;  %v532_v1 = vmov 0.0   ;;  %v509_v2 = vld [vmem:[%s613_s1] sm:$0xff]   ;;  %vm533_vm0 = vmmov 0   ;;  %s619_s24 = smov (!%p218_p3, %s467_s24), 3  ;;  %vm271_vm1 = vcmask 261120   ;;  %v323_v29 = vlaneseq }
   0xc   : > { %489 = vmatprep.subr.bf16.mxu0 %v532_v1  ;;  %493 = vmatprep.mubr.msk.bf16.mxu0 %vm533_vm0, %v532_v1  ;;  %s468_s25 = sshll.u32 %s619_s24, 3  ;;  %v510_v16 = vld [vmem:[%s615_s3 + $0x14] ss:$8 sps:$4 sm:$0xff]   ;;  %v512_v17 = vld [vmem:[%s615_s3 + $0x10] ss:$8 sps:$4 sm:$0xff]   ;;  %v534_v20 = vmov 0  }
   0xd   : > { %490 = vmatpush3.bf16.msra.mxu0 %v508_v0  ;;  %s221_s28 = scalar_lea.vmem %s612_s0, %s468_s25  ;;  %368 = vmatprep.subr.bf16.mxu1 %v510_v16  ;;  %v513_v18 = vld [vmem:[%s615_s3 + $0x4] ss:$8 sps:$4 sm:$0xff]   ;;  %v515_v19 = vld [vmem:[%s615_s3] ss:$8 sps:$4 sm:$0xff]   ;;  %v324_v30 = vshrl.u32 %v323_v29, 7  ;;  %s485_s16 = sshll.u32 %s619_s24, 4 }
   0xe   : > { %491 = vmatprep.subr.bf16.mxu0 %v532_v1  ;;  %v231_v3 = vld [vmem:[%s221_s28] sm:$0xff]  ;;  %v232_v4 = vld [vmem:[%s221_s28 + $0x8] sm:$0xff]  ;;  %369 = vmatpush1.bf16.msra.mxu1 %v512_v17  ;;  %s228_s20 = scalar_lea.vmem %s617_s5, %s485_s16  ;;  %vm400_vm2 = vcmask 523264  }
   0xf   : > { %v472_v5 = vmul.f32 -1.442695, %v231_v3  ;;  %v473_v6 = vmul.f32 -1.442695, %v232_v4  ;;  %370 = vmatprep.subr.bf16.mxu1 %v513_v18  ;;  %388 = vmatprep.mubr.bf16.mxu1 %v534_v20  ;;  %v474_v22 = vld [vmem:[%s614_s2] ss:$0 sm:$0xff] }
  0x10   : > { %v325_v31 = vsub.s32 0, %v324_v30  ;;  %v321_v32 = vld [vmem:[%s616_s4] sm:$0x3]  ;;  %v329_v33 = vsub.s32 1, %v324_v30 }
  0x11   : > { %492 = vmatpush3.bf16.msra.mxu0 %v509_v2  ;;  %516 = vpow2.f32 %v472_v5 }
  0x12   : > { %518 = vpow2.f32 %v473_v6  ;;  %371 = vmatpush1.bf16.msra.mxu1 %v515_v19  ;;  %v326_v34 = vrot.slane %v321_v32, %v325_v31  ;;  %v330_v35 = vrot.slane %v321_v32, %v329_v33 }
  0x1e   : > { %v517_v7 = vpop.eup %516 }
  0x1f   : > { %v519_v8 = vpop.eup %518  ;;  %v239_v9 = vadd.f32 1.0, %v517_v7 }
  0x20   : > { %v240_v10 = vadd.f32 1.0, %v519_v8 }
  0x21   : > { %520 = vrcp.f32 %v239_v9 }
  0x22   : > { %522 = vrcp.f32 %v240_v10 }
  0x2e   : > { %v521_v11 = vpop.eup %520 }
  0x2f   : > { %v523_v12 = vpop.eup %522  ;;  %v245_v13 = vmul.f32 %v521_v11, %v231_v3 }
  0x30   : > { %v246_v14 = vmul.f32 %v523_v12, %v232_v4 }
  0x32   : > { %v247_v15 = vpack.c.bf16 %v246_v14, %v245_v13 }
  0x34   : > { %494 = vmatmul.mubr.msk.bf16.vlgmr.msra.gmra.mxu0 %vm271_vm1, %v247_v15 }
  0xf4   : > { %v309_v21 = vpop.f32.mrf.mxu0 }
  0xf5   : > { %v310_v25 = vadd.f32 %v474_v22, %v309_v21 }
  0xf6   : > { %v495_v23 = vpop.f32.mrf.mxu0 }
  0xf8   : > { %v312_v24 = vpop.f32.mrf.mxu0 }
  0xf9   : > { %v313_v26 = vadd.f32 %v474_v22, %v312_v24 }
  0xfa   : > { %v496_v27 = vpop.f32.mrf.mxu0 }
  0xfb   : > { %v316_v28 = vpack.c.bf16 %v313_v26, %v310_v25 }
  0xfd   : > { %482 = vmatmul.mubr.msk.bf16.vlgmr.msra.gmra.mxu1 %vm271_vm1, %v316_v28 }
 0x1bd   : > { %v390_v36 = vpop.f32.mrf.mxu1 }
 0x1be   : > { %v391_v37 = vadd.f32 %v390_v36, %v326_v34 }
 0x1bf   : > { %v392_v38 = vpop.f32.mrf.mxu1 }
 0x1c0   : > { %399 = vst [vmem:[%s228_s20] sm:$0xff] %v391_v37  ;;  %v393_v39 = vadd.f32 %v392_v38, %v330_v35 }
 0x1c1   : > { %v394_v40 = vpop.f32.mrf.mxu1 }
 0x1c2   : > { %401 = vst.msk [vmem:[%s228_s20 + $0x8] sm:$0xff] %vm400_vm2, %v393_v39  ;;  %v395_v41 = vadd.f32 %v394_v40, %v326_v34 }
 0x1c3   : > { %v396_v42 = vpop.f32.mrf.mxu1 }
 0x1c4   : > { %402 = vst [vmem:[%s228_s20 + $0x10] sm:$0xff] %v395_v41  ;;  %v397_v43 = vadd.f32 %v396_v42, %v330_v35 }
 0x1c6   : > { %403 = vst.msk [vmem:[%s228_s20 + $0x18] sm:$0xff] %vm400_vm2, %v397_v43 }
 0x1c7 PF: > { %s15_s18 = sadd.s32 1, %s530_s18  }
 0x1c8   : > { %p12_p4 = scmp.ge.s32.totalorder %s15_s18, 4  }
 0x1ca   :  { %14 = sbr.rel (!%p12_p4) target bundleno = 1 (0x1), region = 70 }

// kernel: adaln_sa_layer_forward.8
= control target key start
LH: loop header
LB: loop body
LE: loop exit
PB: predicated region body
PF: predicated region fallthrough
CT: control target
= control target key end

     0   :  { %s611_s9 = smov 0   ;;  %s677_s0 = inlined_call_operand.vmem [shape: f32[2,16,96], index: 0, kind: input, shape index: {}]   ;;  %s678_s1 = inlined_call_operand.vmem [shape: f32[2,1,16], index: 1, kind: input, shape index: {}]   ;;  %s679_s2 = inlined_call_operand.vmem [shape: f32[2,16,32], index: 2, kind: output, shape index: {}]  }
   0x1 LB: > { %s497_s10 = sadd.s32 4294967295, %s585_s9   ;;  %p501_p0 = scmp.ge.s32.totalorder %s585_s9, 1  ;;  %s585_s9 = sphi %s611_s9, %s12_s9  }
   0x2   : > { %p120_p1 = scmp.lt.s32.totalorder %s585_s9, 3 }
   0x4   : > { %p121_p2 = pnand %p501_p0, %p120_p1 }
   0x5   : > { %p145_p3 = scmp.lt.s32.totalorder (!%p121_p2), %s497_s10, 1  ;;  %s589_s15 = smov (!%p121_p2), 96  }
   0x6   : > { %124 = sbr.rel (%p121_p2) target bundleno = 1486 (0x5ce), region = 28  ;;  %s591_s19 = smov (!%p121_p2), 64  }
   0x7   : > { %s592_s20 = smov (!%p121_p2), 80   ;;  %s593_s21 = smov (!%p121_p2), 112  }
   0x8   : > { %s594_s22 = smov (!%p121_p2), 48   ;;  %s595_s23 = smov (!%p121_p2), 16  }
   0xb   : > { %v587_v0 = vmov 0.0   ;;  %vm588_vm0 = vmmov 0   ;;  %s681_s10 = smov (!%p145_p3, %s497_s10), 1  ;;  %vm169_vm1 = vcmask 130048   ;;  %v219_v9 = vlaneseq }
   0xc   : > { %522 = vmatprep.subr.bf16.mxu0 %v587_v0  ;;  %524 = vmatprep.mubr.msk.bf16.mxu0 %vm588_vm0, %v587_v0  ;;  %s512_s11 = sshll.u32 %s681_s10, 4  ;;  %s152_s18 = scalar_lea.vmem %s678_s1, %s681_s10  ;;  %v590_v13 = vmov 0   ;;  %vm430_vm4 = vcmask 261120  }
   0xd   : > { %528 = vmatprep.subr.bf16.mxu1 %v587_v0  ;;  %530 = vmatprep.mubr.msk.bf16.mxu1 %vm588_vm0, %v587_v0  ;;  %s149_s14 = scalar_lea.vmem %s677_s0, %s512_s11  ;;  %v161_v10 = vld [vmem:[%s152_s18] sm:$0x1]  ;;  %v220_v11 = vshrl.u32 %v219_v9, 7  ;;  %s157_s26 = scalar_lea.vmem %s679_s2, %s512_s11 }
   0xe   : > { %v159_v1 = vld [vmem:[%s149_s14] sm:$0xff]  ;;  %v160_v2 = vld [vmem:[%s149_s14 + $0x8] sm:$0xff]  ;;  %vm217_vm2 = vcmp.gt.f32.partialorder %v161_v10, 0.0 }
   0xf   : > { %v633_v3 = vpack.c.bf16 %v160_v2, %v159_v1  ;;  %v162_v4 = vmul.f32 0.25, %v159_v1  ;;  %v163_v5 = vmul.f32 0.25, %v160_v2  ;;  %v221_v12 = vsub.s32 0, %v220_v11 }
  0x10   : > { %v218_v14 = vsel %vm217_vm2, 1, %v590_v13 }
  0x11   : > { %167 = vrot.lane.b32.xlu0 %v633_v3, %s589_s15  ;;  %v164_v6 = vpack.c.bf16 %v163_v5, %v162_v4  ;;  %v222_v15 = vrot.slane %v218_v14, %v221_v12 }
  0x13   : > { %vm223_vm3 = vcmp.eq.s32.totalorder %v222_v15, 1 }
  0x83   : > { %v168_v7 = vpop.permute.xlu0 %167 }
  0x84   : > { %v174_v8 = vsel %vm169_vm1, %v168_v7, 0 }
  0x85   : > { %523 = vmatpush3.bf16.xpose.msra.mxu0 %v174_v8 }
  0x86   : > { %540 = vmatprep.subr.bf16.mxu0 %v587_v0 }
  0x8c   : > { %525 = vmatmul.mubr.msk.bf16.vlgmr.msra.gmra.mxu0 %vm169_vm1, %v164_v6 }
  0x8d   : > { %542 = vmatprep.mubr.msk.bf16.mxu0 %vm588_vm0, %v587_v0 }
 0x14c   : > { %v210_v16 = vpop.f32.mrf.mxu0 }
 0x14d   : > { %v224_v17 = vsel %vm223_vm3, -1e+30, %v210_v16 }
 0x14e   : > { %v526_v18 = vpop.f32.mrf.mxu0  ;;  %v226_v19 = vsel %vm169_vm1, %v224_v17, -inf }
 0x14f   : > { %227 = vmax.xlane.f32.xlu0 %v226_v19 }
 0x150   : > { %v213_v20 = vpop.f32.mrf.mxu0 }
 0x151   : > { %v225_v21 = vsel %vm223_vm3, -1e+30, %v213_v20 }
 0x152   : > { %v527_v22 = vpop.f32.mrf.mxu0  ;;  %v229_v23 = vsel %vm169_vm1, %v225_v21, -inf }
 0x153   : > { %230 = vmax.xlane.f32.xlu1 %v229_v23 }
 0x164   : > { %249 = vrot.lane.b32.xlu1 %v633_v3, %s591_s19 }
 0x1d8   : > { %v228_v24 = vpop.xlane.xlu0 %227 }
 0x1d9   : > { %v232_v25 = vsub.f32 %v224_v17, %v228_v24 }
 0x1db   : > { %v234_v26 = vmul.f32 1.442695, %v232_v25 }
 0x1dc   : > { %v231_v27 = vpop.xlane.xlu1 %230 }
 0x1dd   : > { %563 = vpow2.f32 %v234_v26  ;;  %v233_v28 = vsub.f32 %v225_v21, %v231_v27 }
 0x1df   : > { %v236_v29 = vmul.f32 1.442695, %v233_v28 }
 0x1e0   : > { %v250_v30 = vpop.permute.xlu1 %249 }
 0x1e1   : > { %565 = vpow2.f32 %v236_v29  ;;  %529 = vmatpush3.bf16.msra.mxu1 %v250_v30 }
 0x1e2   : > { %534 = vmatprep.subr.bf16.mxu1 %v587_v0 }
 0x1ea   : > { %v564_v31 = vpop.eup %563 }
 0x1eb   : > { %v238_v32 = vsel %vm169_vm1, %v564_v31, 0.0 }
 0x1ec   : > { %239 = vadd.xlane.f32.xlu1 %v238_v32 }
 0x1ee   : > { %v566_v33 = vpop.eup %565 }
 0x1ef   : > { %v241_v34 = vsel %vm169_vm1, %v566_v33, 0.0 }
 0x1f0   : > { %242 = vadd.xlane.f32.xlu1 %v241_v34 }
 0x201   : > { %299 = vrot.lane.b32.xlu1 %v633_v3, %s592_s20 }
 0x205   : > { %297 = vrot.lane.b32.xlu1 %v164_v6, %s593_s21 }
 0x275   : > { %v240_v35 = vpop.xlane.xlu1 %239 }
 0x276   : > { %567 = vrcp.f32 %v240_v35 }
 0x279   : > { %v243_v36 = vpop.xlane.xlu1 %242 }
 0x27a   : > { %569 = vrcp.f32 %v243_v36 }
 0x27d   : > { %v300_v39 = vpop.permute.xlu1 %299 }
 0x27e   : > { %v305_v42 = vsel %vm169_vm1, %v300_v39, 0 }
 0x281   : > { %v298_v44 = vpop.permute.xlu1 %297 }
 0x283   : > { %v568_v37 = vpop.eup %567 }
 0x284   : > { %v246_v40 = vmul.f32 %v568_v37, %v564_v31 }
 0x287   : > { %v570_v38 = vpop.eup %569 }
 0x288   : > { %v247_v41 = vmul.f32 %v570_v38, %v566_v33 }
 0x28a   : > { %v248_v43 = vpack.c.bf16 %v247_v41, %v246_v40 }
 0x28c   : > { %531 = vmatmul.mubr.msk.bf16.vlgmr.msra.gmra.mxu1 %vm169_vm1, %v248_v43 }
 0x28d   : > { %535 = vmatpush3.bf16.xpose.msra.mxu1 %v305_v42  ;;  %536 = vmatprep.mubr.msk.bf16.mxu1 %vm588_vm0, %v587_v0 }
 0x294   : > { %537 = vmatmul.mubr.msk.bf16.vlgmr.msra.gmra.mxu1 %vm169_vm1, %v298_v44 }
 0x34c   : > { %v289_v45 = vpop.f32.mrf.mxu1 }
 0x34e   : > { %v532_v46 = vpop.f32.mrf.mxu1 }
 0x350   : > { %v292_v47 = vpop.f32.mrf.mxu1 }
 0x352   : > { %v533_v48 = vpop.f32.mrf.mxu1 }
 0x354   : > { %v341_v49 = vpop.f32.mrf.mxu1 }
 0x355   : > { %v348_v50 = vsel %vm223_vm3, -1e+30, %v341_v49 }
 0x356   : > { %v538_v51 = vpop.f32.mrf.mxu1  ;;  %v350_v52 = vsel %vm169_vm1, %v348_v50, -inf }
 0x357   : > { %351 = vmax.xlane.f32.xlu0 %v350_v52 }
 0x358   : > { %v344_v53 = vpop.f32.mrf.mxu1 }
 0x359   : > { %v349_v54 = vsel %vm223_vm3, -1e+30, %v344_v53 }
 0x35a   : > { %v539_v55 = vpop.f32.mrf.mxu1  ;;  %v353_v56 = vsel %vm169_vm1, %v349_v54, -inf }
 0x35b   : > { %354 = vmax.xlane.f32.xlu1 %v353_v56 }
 0x3e0   : > { %v352_v57 = vpop.xlane.xlu0 %351 }
 0x3e1   : > { %v356_v58 = vsub.f32 %v348_v50, %v352_v57 }
 0x3e3   : > { %v358_v59 = vmul.f32 1.442695, %v356_v58 }
 0x3e4   : > { %v355_v60 = vpop.xlane.xlu1 %354 }
 0x3e5   : > { %571 = vpow2.f32 %v358_v59  ;;  %v357_v61 = vsub.f32 %v349_v54, %v355_v60 }
 0x3e7   : > { %v360_v62 = vmul.f32 1.442695, %v357_v61 }
 0x3e9   : > { %573 = vpow2.f32 %v360_v62 }
 0x3f2   : > { %v572_v63 = vpop.eup %571 }
 0x3f3   : > { %v362_v0 = vsel %vm169_vm1, %v572_v63, 0.0 }
 0x3f4   : > { %363 = vadd.xlane.f32.xlu0 %v362_v0 }
 0x3f6   : > { %v574_v1 = vpop.eup %573 }
 0x3f7   : > { %v365_v2 = vsel %vm169_vm1, %v574_v1, 0.0 }
 0x3f8   : > { %366 = vadd.xlane.f32.xlu0 %v365_v2 }
 0x40e   : > { %373 = vrot.lane.b32.xlu0 %v633_v3, %s594_s22 }
 0x47d   : > { %v364_v4 = vpop.xlane.xlu0 %363 }
 0x47e   : > { %575 = vrcp.f32 %v364_v4 }
 0x481   : > { %v367_v5 = vpop.xlane.xlu0 %366 }
 0x482   : > { %577 = vrcp.f32 %v367_v5 }
 0x485   : > { %v374_v6 = vpop.permute.xlu0 %373 }
 0x486   : > { %541 = vmatpush3.bf16.msra.mxu0 %v374_v6 }
 0x48b   : > { %v576_v7 = vpop.eup %575 }
 0x48c   : > { %v370_v9 = vmul.f32 %v576_v7, %v572_v63 }
 0x48f   : > { %v578_v8 = vpop.eup %577 }
 0x490   : > { %v371_v10 = vmul.f32 %v578_v8, %v574_v1 }
 0x492   : > { %v372_v11 = vpack.c.bf16 %v371_v10, %v370_v9 }
 0x494   : > { %543 = vmatmul.mubr.msk.bf16.vlgmr.msra.gmra.mxu0 %vm169_vm1, %v372_v11 }
 0x554   : > { %v413_v12 = vpop.f32.mrf.mxu0 }
 0x555   : > { %422 = vrot.lane.b32.xlu0 %v413_v12, %s595_s23 }
 0x556   : > { %v544_v13 = vpop.f32.mrf.mxu0 }
 0x558   : > { %v416_v14 = vpop.f32.mrf.mxu0 }
 0x559   : > { %424 = vrot.lane.b32.xlu0 %v416_v14, %s595_s23 }
 0x55a   : > { %v545_v3 = vpop.f32.mrf.mxu0 }
 0x5c7   : > { %v423_v15 = vpop.permute.xlu0 %422 }
 0x5c8   : > { %v428_v16 = vsel %vm169_vm1, %v289_v45, %v423_v15 }
 0x5c9   : > { %431 = vst.msk [vmem:[%s157_s26] sm:$0xff] %vm430_vm4, %v428_v16 }
 0x5cb   : > { %v425_v17 = vpop.permute.xlu0 %424 }
 0x5cc   : > { %v429_v18 = vsel %vm169_vm1, %v292_v47, %v425_v17 }
 0x5cd   : > { %432 = vst.msk [vmem:[%s157_s26 + $0x8] sm:$0xff] %vm430_vm4, %v429_v18 }
 0x5ce PF: > { %s12_s9 = sadd.s32 1, %s585_s9  }
 0x5cf   : > { %p9_p4 = scmp.ge.s32.totalorder %s12_s9, 4  }
 0x5d1   :  { %11 = sbr.rel (!%p9_p4) target bundleno = 1 (0x1), region = 61 }

// kernel: adaln_sa_layer_forward.9
= control target key start
LH: loop header
LB: loop body
LE: loop exit
PB: predicated region body
PF: predicated region fallthrough
CT: control target
= control target key end

     0   :  { %s617_s21 = smov 0   ;;  %s661_s0 = inlined_call_operand.vmem [shape: f32[32,32], index: 0, kind: input, shape index: {}]   ;;  %s662_s1 = inlined_call_operand.vmem [shape: bf16[32,32], index: 1, kind: input, shape index: {}]   ;;  %s663_s2 = inlined_call_operand.vmem [shape: f32[1,32], index: 2, kind: input, shape index: {}]   ;;  %s664_s3 = inlined_call_operand.vmem [shape: f32[32,192], index: 3, kind: input, shape index: {}]   ;;  %s665_s4 = inlined_call_operand.vmem [shape: f32[32,32], index: 4, kind: input, shape index: {}]   ;;  %s666_s5 = inlined_call_operand.vmem [shape: f32[32,1], index: 5, kind: input, shape index: {}]   ;;  %s667_s6 = inlined_call_operand.vmem [shape: f32[32,32], index: 6, kind: output, shape index: {}]  }
   0x1 LB: > { %s520_s22 = sadd.s32 4294967295, %s576_s21   ;;  %p524_p0 = scmp.ge.s32.totalorder %s576_s21, 1  ;;  %s576_s21 = sphi %s617_s21, %s16_s21  }
   0x2   : > { %p247_p1 = scmp.lt.s32.totalorder %s576_s21, 3 }
   0x4   : > { %p248_p2 = pnand %p524_p0, %p247_p1 }
   0x5   : > { %s525_s27 = sshll.u32 (!%p248_p2), %s520_s22, 1  ;;  %s581_s15 = smov (!%p248_p2), 64  }
   0x6   : > { %251 = sbr.rel (%p248_p2) target bundleno = 226 (0xe2), region = 44  ;;  %p294_p3 = scmp.lt.s32.totalorder (!%p248_p2), %s525_s27, 3 }
   0xb   : > { %v568_v0 = vld [vmem:[%s662_s1 + $0x8] sm:$0xff]   ;;  %v578_v1 = vmov 0.0   ;;  %v569_v2 = vld [vmem:[%s662_s1] sm:$0xff]   ;;  %vm579_vm0 = vmmov 0   ;;  %v580_v3 = vmov 0   ;;  %s669_s27 = smov (!%p294_p3, %s525_s27), 3 }
   0xc   : > { %546 = vmatprep.subr.bf16.mxu0 %v578_v1  ;;  %550 = vmatprep.mubr.msk.bf16.mxu0 %vm579_vm0, %v578_v1  ;;  %s631_s28 = sshll.u32 %s669_s27, 3  ;;  %s542_s29 = sshll.u32 %s669_s27, 4  ;;  %vm351_vm1 = vcmask 261120   ;;  %v536_v12 = vld [vmem:[%s663_s2] ss:$0 sm:$0xff] }
   0xd   : > { %547 = vmatpush3.bf16.msra.mxu0 %v568_v0  ;;  %566 = vset.pattern.permute.xlu0 %v580_v3  ;;  %s297_s8 = scalar_lea.vmem %s661_s0, %s631_s28  ;;  %s316_s11 = scalar_lea.vmem %s666_s5, %s631_s28 }
   0xe   : > { %548 = vmatprep.subr.bf16.mxu0 %v578_v1  ;;  %567 = vset.pattern.permute.xlu1 %v580_v3  ;;  %v325_v4 = vld [vmem:[%s297_s8] sm:$0xff]  ;;  %v326_v5 = vld [vmem:[%s297_s8 + $0x8] sm:$0xff]  ;;  %s304_s14 = scalar_lea.vmem %s664_s3, %s542_s29  ;;  %s310_s20 = scalar_lea.vmem %s665_s4, %s631_s28 }
   0xf   : > { %v412_v6 = vld [vmem:[%s316_s11] sm:$0xff]  ;;  %v327_v7 = vpack.c.bf16 %v326_v5, %v325_v4  ;;  %v413_v8 = vld [vmem:[%s316_s11 + $0x8] sm:$0xff]  ;;  %v397_v10 = vld [vmem:[%s304_s14 + $0x10] sm:$0xff]  ;;  %s322_s24 = scalar_lea.vmem %s667_s6, %s631_s28 }
  0x10   : > { %416 = vperm.xlu0 %566, %v412_v6   ;;  %421 = vperm.xlu1 %567, %v413_v8   ;;  %v396_v9 = vld [vmem:[%s304_s14] sm:$0xff]  ;;  %v399_v24 = vld [vmem:[%s310_s20 + $0x8] sm:$0xff] }
  0x11   : > { %549 = vmatpush3.bf16.msra.mxu0 %v569_v2  ;;  %v398_v17 = vld [vmem:[%s310_s20] sm:$0xff] }
  0x14   : > { %551 = vmatmul.mubr.msk.bf16.vlgmr.msra.gmra.mxu0 %vm351_vm1, %v327_v7  ;;  %402 = vrot.lane.b32.xlu0 %v396_v9, %s581_s15 }
  0x15   : > { %404 = vrot.lane.b32.xlu1 %v397_v10, %s581_s15 }
  0x8b   : > { %v417_v11 = vpop.permute.xlu0 %416  ;;  %v422_v13 = vpop.permute.xlu1 %421 }
  0x8f   : > { %v403_v15 = vpop.permute.xlu0 %402  ;;  %v405_v21 = vpop.permute.xlu1 %404 }
  0xd4   : > { %v389_v14 = vpop.f32.mrf.mxu0 }
  0xd5   : > { %v390_v16 = vadd.f32 %v536_v12, %v389_v14 }
  0xd6   : > { %v552_v18 = vpop.f32.mrf.mxu0 }
  0xd7   : > { %v408_v19 = vmul.f32 %v403_v15, %v390_v16 }
  0xd8   : > { %v392_v20 = vpop.f32.mrf.mxu0 }
  0xd9   : > { %v410_v22 = vadd.f32 %v408_v19, %v398_v17  ;;  %v393_v23 = vadd.f32 %v536_v12, %v392_v20 }
  0xda   : > { %v553_v25 = vpop.f32.mrf.mxu0 }
  0xdb   : > { %v424_v26 = vmul.f32 %v417_v11, %v410_v22  ;;  %v409_v27 = vmul.f32 %v405_v21, %v393_v23 }
  0xdd   : > { %426 = vst.msk [vmem:[%s322_s24] sm:$0xff] %vm351_vm1, %v424_v26  ;;  %v411_v28 = vadd.f32 %v409_v27, %v399_v24 }
  0xdf   : > { %v425_v29 = vmul.f32 %v422_v13, %v411_v28 }
  0xe1   : > { %427 = vst.msk [vmem:[%s322_s24 + $0x8] sm:$0xff] %vm351_vm1, %v425_v29 }
  0xe2 PF: > { %s16_s21 = sadd.s32 1, %s576_s21  }
  0xe3   : > { %p13_p4 = scmp.ge.s32.totalorder %s16_s21, 4  }
  0xe5   :  { %15 = sbr.rel (!%p13_p4) target bundleno = 1 (0x1), region = 83 }

// kernel: adaln_sa_layer_forward.11
= control target key start
LH: loop header
LB: loop body
LE: loop exit
PB: predicated region body
PF: predicated region fallthrough
CT: control target
= control target key end

     0   :  { %s691_s21 = smov 0   ;;  %s750_s0 = inlined_call_operand.vmem [shape: f32[32,128], index: 0, kind: input, shape index: {}]   ;;  %s751_s1 = inlined_call_operand.vmem [shape: bf16[128,32], index: 1, kind: input, shape index: {}]   ;;  %s752_s2 = inlined_call_operand.vmem [shape: f32[1,32], index: 2, kind: input, shape index: {}]   ;;  %s753_s3 = inlined_call_operand.vmem [shape: f32[32,192], index: 3, kind: input, shape index: {}]   ;;  %s754_s4 = inlined_call_operand.vmem [shape: f32[32,32], index: 4, kind: input, shape index: {}]   ;;  %s755_s5 = inlined_call_operand.vmem [shape: f32[32,1], index: 5, kind: input, shape index: {}]   ;;  %s756_s6 = inlined_call_operand.vmem [shape: f32[32,32], index: 6, kind: output, shape index: {}]  }
   0x1 LB: > { %s565_s22 = sadd.s32 4294967295, %s650_s21   ;;  %p569_p0 = scmp.ge.s32.totalorder %s650_s21, 1  ;;  %s650_s21 = sphi %s691_s21, %s16_s21  }
   0x2   : > { %p247_p1 = scmp.lt.s32.totalorder %s650_s21, 3 }
   0x4   : > { %p248_p2 = pnand %p569_p0, %p247_p1 }
   0x5   : > { %s570_s27 = sshll.u32 (!%p248_p2), %s565_s22, 1  ;;  %s655_s18 = smov (!%p248_p2), 96  }
   0x6   : > { %251 = sbr.rel (%p248_p2) target bundleno = 250 (0xfa), region = 44  ;;  %p294_p3 = scmp.lt.s32.totalorder (!%p248_p2), %s570_s27, 3 }
   0xb   : > { %v636_v0 = vld [vmem:[%s751_s1 + $0x38] sm:$0xff]   ;;  %v652_v1 = vmov 0.0   ;;  %v637_v2 = vld [vmem:[%s751_s1 + $0x30] sm:$0xff]   ;;  %vm653_vm0 = vmmov 0   ;;  %s758_s27 = smov (!%p294_p3, %s570_s27), 3  ;;  %v654_v3 = vmov 0  }
   0xc   : > { %602 = vmatprep.subr.bf16.mxu0 %v652_v1  ;;  %618 = vmatprep.mubr.msk.bf16.mxu0 %vm653_vm0, %v652_v1  ;;  %v638_v4 = vld [vmem:[%s751_s1 + $0x28] sm:$0xff]   ;;  %s708_s30 = sshll.u32 %s758_s27, 3  ;;  %s592_s10 = sshll.u32 %s758_s27, 4  ;;  %v639_v6 = vld [vmem:[%s751_s1 + $0x20] sm:$0xff]   ;;  %v640_v10 = vld [vmem:[%s751_s1 + $0x18] sm:$0xff]   ;;  %vm470_vm1 = vcmask 261120  }
   0xd   : > { %603 = vmatpush3.bf16.msra.mxu0 %v636_v0  ;;  %634 = vset.pattern.permute.xlu0 %v654_v3  ;;  %s316_s9 = scalar_lea.vmem %s755_s5, %s708_s30  ;;  %s304_s15 = scalar_lea.vmem %s753_s3, %s592_s10  ;;  %v641_v11 = vld [vmem:[%s751_s1 + $0x10] sm:$0xff]   ;;  %v642_v12 = vld [vmem:[%s751_s1 + $0x8] sm:$0xff]   ;;  %v643_v13 = vld [vmem:[%s751_s1] sm:$0xff]  }
   0xe   : > { %604 = vmatprep.subr.bf16.mxu0 %v652_v1  ;;  %635 = vset.pattern.permute.xlu1 %v654_v3  ;;  %v456_v5 = vld [vmem:[%s316_s9] sm:$0xff]  ;;  %v457_v7 = vld [vmem:[%s316_s9 + $0x8] sm:$0xff]  ;;  %v441_v9 = vld [vmem:[%s304_s15 + $0x18] sm:$0xff]  ;;  %s297_s26 = scalar_lea.vmem %s750_s0, %s708_s30  ;;  %s310_s10 = scalar_lea.vmem %s754_s4, %s708_s30 }
   0xf   : > { %460 = vperm.xlu0 %634, %v456_v5   ;;  %465 = vperm.xlu1 %635, %v457_v7   ;;  %v440_v8 = vld [vmem:[%s304_s15 + $0x8] sm:$0xff]  ;;  %v325_v14 = vld [vmem:[%s297_s26] sm:$0xff]  ;;  %s322_s13 = scalar_lea.vmem %s756_s6, %s708_s30 }
  0x10   : > { %v326_v15 = vld [vmem:[%s297_s26 + $0x8] sm:$0xff]  ;;  %v581_v18 = vld [vmem:[%s752_s2] ss:$0 sm:$0xff] }
  0x11   : > { %605 = vmatpush3.bf16.msra.mxu0 %v637_v2  ;;  %v327_v16 = vpack.c.bf16 %v326_v15, %v325_v14  ;;  %v442_v23 = vld [vmem:[%s310_s10] sm:$0xff]  ;;  %v443_v30 = vld [vmem:[%s310_s10 + $0x8] sm:$0xff] }
  0x12   : > { %606 = vmatprep.subr.bf16.mxu0 %v652_v1 }
  0x13   : > { %446 = vrot.lane.b32.xlu0 %v440_v8, %s655_s18  ;;  %448 = vrot.lane.b32.xlu1 %v441_v9, %s655_s18 }
  0x15   : > { %607 = vmatpush3.bf16.msra.mxu0 %v638_v4 }
  0x16   : > { %608 = vmatprep.subr.bf16.mxu0 %v652_v1 }
  0x19   : > { %609 = vmatpush3.bf16.msra.mxu0 %v639_v6 }
  0x1a   : > { %610 = vmatprep.subr.bf16.mxu0 %v652_v1 }
  0x1d   : > { %611 = vmatpush3.bf16.msra.mxu0 %v640_v10 }
  0x1e   : > { %612 = vmatprep.subr.bf16.mxu0 %v652_v1 }
  0x21   : > { %613 = vmatpush3.bf16.msra.mxu0 %v641_v11 }
  0x22   : > { %614 = vmatprep.subr.bf16.mxu0 %v652_v1 }
  0x25   : > { %615 = vmatpush3.bf16.msra.mxu0 %v642_v12 }
  0x26   : > { %616 = vmatprep.subr.bf16.mxu0 %v652_v1 }
  0x29   : > { %617 = vmatpush3.bf16.msra.mxu0 %v643_v13 }
  0x2c   : > { %619 = vmatmul.mubr.bf16.vlgmr.msra.gmra.mxu0 %v327_v16 }
  0x8a   : > { %v461_v17 = vpop.permute.xlu0 %460  ;;  %v466_v19 = vpop.permute.xlu1 %465 }
  0x8e   : > { %v447_v21 = vpop.permute.xlu0 %446  ;;  %v449_v27 = vpop.permute.xlu1 %448 }
  0xec   : > { %v433_v20 = vpop.f32.mrf.mxu0 }
  0xed   : > { %v434_v22 = vadd.f32 %v581_v18, %v433_v20 }
  0xee   : > { %v620_v24 = vpop.f32.mrf.mxu0 }
  0xef   : > { %v452_v25 = vmul.f32 %v447_v21, %v434_v22 }
  0xf0   : > { %v436_v26 = vpop.f32.mrf.mxu0 }
  0xf1   : > { %v454_v28 = vadd.f32 %v452_v25, %v442_v23  ;;  %v437_v29 = vadd.f32 %v581_v18, %v436_v26 }
  0xf2   : > { %v621_v31 = vpop.f32.mrf.mxu0 }
  0xf3   : > { %v468_v32 = vmul.f32 %v461_v17, %v454_v28  ;;  %v453_v33 = vmul.f32 %v449_v27, %v437_v29 }
  0xf5   : > { %471 = vst.msk [vmem:[%s322_s13] sm:$0xff] %vm470_vm1, %v468_v32  ;;  %v455_v34 = vadd.f32 %v453_v33, %v443_v30 }
  0xf7   : > { %v469_v35 = vmul.f32 %v466_v19, %v455_v34 }
  0xf9   : > { %472 = vst.msk [vmem:[%s322_s13 + $0x8] sm:$0xff] %vm470_vm1, %v469_v35 }
  0xfa PF: > { %s16_s21 = sadd.s32 1, %s650_s21  }
  0xfb   : > { %p13_p4 = scmp.ge.s32.totalorder %s16_s21, 4  }
  0xfd   :  { %15 = sbr.rel (!%p13_p4) target bundleno = 1 (0x1), region = 83 }

// kernel: adaln_sa_layer_forward.10
= control target key start
LH: loop header
LB: loop body
LE: loop exit
PB: predicated region body
PF: predicated region fallthrough
CT: control target
= control target key end

     0   :  { %s961_s21 = smov 0   ;;  %s1115_s0 = inlined_call_operand.vmem [shape: f32[2,16,32], index: 0, kind: input, shape index: {}]   ;;  %s1116_s1 = inlined_call_operand.vmem [shape: f32[1,32], index: 1, kind: input, shape index: {}]   ;;  %s1117_s2 = inlined_call_operand.vmem [shape: f32[1,32], index: 2, kind: input, shape index: {}]   ;;  %s1118_s3 = inlined_call_operand.vmem [shape: f32[2,16,192], index: 3, kind: input, shape index: {}]   ;;  %s1119_s4 = inlined_call_operand.vmem [shape: bf16[288,128], index: 4, kind: input, shape index: {}]   ;;  %s1120_s5 = inlined_call_operand.vmem [shape: f32[1,128], index: 5, kind: input, shape index: {}]   ;;  %s1121_s6 = inlined_call_operand.vmem [shape: f32[2,16,128], index: 6, kind: output, shape index: {}]  }
   0x1 LB: > { %s773_s22 = sadd.s32 4294967295, %s919_s21   ;;  %p777_p0 = scmp.ge.s32.totalorder %s919_s21, 1  ;;  %s919_s21 = sphi %s961_s21, %s16_s21  }
   0x2   : > { %p222_p1 = scmp.lt.s32.totalorder %s919_s21, 3 }
   0x4   : > { %p223_p2 = pnand %p777_p0, %p222_p1 }
   0x5   : > { %p257_p3 = scmp.lt.s32.totalorder (!%p223_p2), %s773_s22, 1  ;;  %s921_s7 = smov (!%p223_p2), 32  }
   0x6   : > { %226 = sbr.rel (%p223_p2) target bundleno = 708 (0x2c4), region = 44  ;;  %s925_s10 = smov (!%p223_p2), 96  }
   0xb   : > { %s1123_s22 = smov (!%p257_p3, %s773_s22), 1  ;;  %vm275_vm0 = vcmask 261120   ;;  %v887_v16 = vld [vmem:[%s1119_s4 + $0x88] sm:$0xff]   ;;  %v922_v17 = vmov 0.0   ;;  %v888_v18 = vld [vmem:[%s1119_s4 + $0x80] sm:$0xff]   ;;  %vm923_vm1 = vmmov 0  }
   0xc   : > { %s808_s23 = sshll.u32 %s1123_s22, 4  ;;  %s809_s27 = sshll.u32 %s1123_s22, 5  ;;  %836 = vmatprep.subr.bf16.mxu1 %v922_v17  ;;  %840 = vmatprep.mubr.msk.bf16.mxu1 %vm923_vm1, %v922_v17  ;;  %v889_v19 = vld [vmem:[%s1119_s4 + $0x78] sm:$0xff]   ;;  %v891_v21 = vld [vmem:[%s1119_s4 + $0x70] sm:$0xff]   ;;  %v893_v23 = vld [vmem:[%s1119_s4 + $0x68] sm:$0xff]   ;;  %vm341_vm2 = vcmask 1043456  }
   0xd   : > { %s261_s26 = scalar_lea.vmem %s1115_s0, %s808_s23  ;;  %s983_s30 = scalar_lea.vmem %s1118_s3, %s809_s27  ;;  %837 = vmatpush3.bf16.msra.mxu1 %v887_v16  ;;  %v890_v20 = vld [vmem:[%s1119_s4 + $0x38] sm:$0xff]   ;;  %811 = vmatprep.subr.bf16.mxu0 %v889_v19  ;;  %v892_v22 = vld [vmem:[%s1119_s4 + $0x30] sm:$0xff]   ;;  %v894_v24 = vld [vmem:[%s1119_s4 + $0x28] sm:$0xff]   ;;  %vm407_vm3 = vcmask 1041408   ;;  %vm395_vm4 = vcmask 1042432   ;;  %vm419_vm5 = vcmask 1040384  }
   0xe   : > { %v273_v0 = vld [vmem:[%s261_s26] sm:$0xff]  ;;  %v274_v1 = vld [vmem:[%s261_s26 + $0x8] sm:$0xff]  ;;  %v323_v15 = vld [vmem:[%s983_s30 + $0x10] sm:$0xff]  ;;  %838 = vmatprep.subr.bf16.mxu1 %v922_v17  ;;  %812 = vmatpush3.bf16.msra.mxu0 %v890_v20  ;;  %vm352_vm6 = vcmask 1046528   ;;  %s924_s27 = smov 64   ;;  %vm364_vm7 = vcmask 1045504   ;;  %s271_s14 = scalar_lea.vmem %s1121_s6, %s808_s23 }
   0xf   : > { %v276_v2 = vsel %vm275_vm0, %v273_v0, 0.0  ;;  %v279_v3 = vsel %vm275_vm0, %v274_v1, 0.0  ;;  %v321_v4 = vld [vmem:[%s983_s30] sm:$0xff]  ;;  %813 = vmatprep.subr.bf16.mxu0 %v891_v21  ;;  %v322_v35 = vld [vmem:[%s983_s30 + $0x8] sm:$0xff]  ;;  %v324_v41 = vld [vmem:[%s983_s30 + $0x18] sm:$0xff]  ;;  %vm376_vm8 = vcmask 1044480  }
  0x10   : > { %277 = vadd.xlane.f32.xlu0 %v276_v2  ;;  %v895_v25 = vld [vmem:[%s1119_s4 + $0x60] sm:$0xff]   ;;  %v325_v39 = vadd.f32 1.0, %v322_v35  ;;  %v326_v47 = vadd.f32 1.0, %v324_v41  ;;  %v897_v53 = vld [vmem:[%s1119_s4 + $0x58] sm:$0xff]   ;;  %v899_v63 = vld [vmem:[%s1119_s4 + $0x50] sm:$0xff]   ;;  %vm433_vm9 = vcmask 523264  }
  0x11   : > { %839 = vmatpush3.bf16.msra.mxu1 %v888_v18  ;;  %v896_v26 = vld [vmem:[%s1119_s4 + $0x20] sm:$0xff]   ;;  %v898_v54 = vld [vmem:[%s1119_s4 + $0x18] sm:$0xff]   ;;  %v901_v16 = vld [vmem:[%s1119_s4 + $0x48] sm:$0xff]   ;;  %vm436_vm10 = vcmask 785408  }
  0x12   : > { %814 = vmatpush3.bf16.msra.mxu0 %v892_v22  ;;  %v784_v34 = vld [vmem:[%s1116_s1] ss:$0 sm:$0xff]  ;;  %v902_v17 = vld [vmem:[%s1119_s4 + $0x8] sm:$0xff]  }
  0x13   : > { %815 = vmatprep.subr.bf16.mxu0 %v893_v23  ;;  %v785_v37 = vld [vmem:[%s1117_s2] ss:$0 sm:$0xff] }
  0x14   : > { %280 = vadd.xlane.f32.xlu0 %v279_v3 }
  0x16   : > { %816 = vmatpush3.bf16.msra.mxu0 %v894_v24 }
  0x17   : > { %817 = vmatprep.subr.bf16.mxu0 %v895_v25  ;;  %v903_v25 = vld [vmem:[%s1119_s4 + $0x40] sm:$0xff]  }
  0x1a   : > { %818 = vmatpush3.bf16.msra.mxu0 %v896_v26 }
  0x1b   : > { %819 = vmatprep.subr.bf16.mxu0 %v897_v53 }
  0x1e   : > { %820 = vmatpush3.bf16.msra.mxu0 %v898_v54 }
  0x1f   : > { %821 = vmatprep.subr.bf16.mxu0 %v899_v63 }
  0x2a   : > { %331 = vrot.lane.b32.xlu0 %v321_v4, %s921_s7 }
  0x99   : > { %v278_v5 = vpop.xlane.xlu0 %277 }
  0x9a   : > { %v283_v6 = vmul.f32 0.03125, %v278_v5 }
  0x9c   : > { %v285_v7 = vsub.f32 %v273_v0, %v283_v6  ;;  %v900_v0 = vld [vmem:[%s1119_s4 + $0x10] sm:$0xff]  }
  0x9d   : > { %v281_v8 = vpop.xlane.xlu0 %280  ;;  %822 = vmatpush3.bf16.msra.mxu0 %v900_v0 }
  0x9e   : > { %v284_v9 = vmul.f32 0.03125, %v281_v8  ;;  %v287_v10 = vmul.f32 %v285_v7, %v285_v7  ;;  %823 = vmatprep.subr.bf16.mxu0 %v901_v16 }
  0xa0   : > { %v286_v11 = vsub.f32 %v274_v1, %v284_v9  ;;  %v289_v12 = vsel %vm275_vm0, %v287_v10, 0.0 }
  0xa1   : > { %290 = vadd.xlane.f32.xlu1 %v289_v12  ;;  %v332_v44 = vpop.permute.xlu0 %331  ;;  %824 = vmatpush3.bf16.msra.mxu0 %v902_v17 }
  0xa2   : > { %v288_v13 = vmul.f32 %v286_v11, %v286_v11  ;;  %825 = vmatprep.subr.bf16.mxu0 %v903_v25 }
  0xa4   : > { %v292_v14 = vsel %vm275_vm0, %v288_v13, 0.0 }
  0xa5   : > { %293 = vadd.xlane.f32.xlu1 %v292_v14 }
  0xb6   : > { %333 = vrot.lane.b32.xlu1 %v323_v15, %s921_s7 }
 0x12a   : > { %v291_v27 = vpop.xlane.xlu1 %290 }
 0x12b   : > { %v295_v28 = vmul.f32 0.03125, %v291_v27 }
 0x12d   : > { %v297_v29 = vadd.f32 1e-05, %v295_v28  ;;  %v904_v28 = vld [vmem:[%s1119_s4] sm:$0xff]  }
 0x12e   : > { %v294_v30 = vpop.xlane.xlu1 %293  ;;  %826 = vmatpush3.bf16.msra.mxu0 %v904_v28 }
 0x12f   : > { %905 = vrsqrt.f32 %v297_v29  ;;  %v296_v31 = vmul.f32 0.03125, %v294_v30 }
 0x131   : > { %v298_v32 = vadd.f32 1e-05, %v296_v31 }
 0x132   : > { %v334_v50 = vpop.permute.xlu1 %333 }
 0x133   : > { %907 = vrsqrt.f32 %v298_v32 }
 0x13c   : > { %v906_v33 = vpop.eup %905 }
 0x13d   : > { %v301_v36 = vmul.f32 %v906_v33, %v285_v7 }
 0x13f   : > { %v310_v38 = vmul.f32 %v784_v34, %v301_v36 }
 0x140   : > { %v908_v40 = vpop.eup %907 }
 0x141   : > { %v319_v42 = vadd.f32 %v785_v37, %v310_v38  ;;  %v302_v43 = vmul.f32 %v908_v40, %v286_v11 }
 0x143   : > { %v327_v45 = vmul.f32 %v325_v39, %v319_v42  ;;  %v311_v46 = vmul.f32 %v784_v34, %v302_v43 }
 0x145   : > { %v337_v48 = vadd.f32 %v332_v44, %v327_v45  ;;  %v320_v49 = vadd.f32 %v785_v37, %v311_v46 }
 0x147   : > { %v342_v51 = vrot.slane %v337_v48, 4  ;;  %v328_v52 = vmul.f32 %v326_v47, %v320_v49 }
 0x149   : > { %v1036_v55 = vsel %vm341_vm2, 0.0, %v342_v51  ;;  %v338_v56 = vadd.f32 %v334_v50, %v328_v52 }
 0x14a   : > { %v408_v58 = vrot.slane %v1036_v55, 6  ;;  %v396_v61 = vrot.slane %v1036_v55, 5  ;;  %v420_v62 = vrot.slane %v1036_v55, 7  ;;  %v353_v15 = vrot.slane %v1036_v55, 1 }
 0x14b   : > { %v343_v57 = vrot.slane %v338_v56, 4  ;;  %v365_v30 = vrot.slane %v1036_v55, 2  ;;  %v377_v37 = vrot.slane %v1036_v55, 3  ;;  %v388_v44 = vrot.slane %v1036_v55, 4 }
 0x14d   : > { %v1040_v59 = vsel %vm341_vm2, %v342_v51, %v343_v57  ;;  %v349_v60 = vsel %vm341_vm2, %v343_v57, 0.0 }
 0x14e   : > { %v447_v1 = vpack.c.bf16 %v349_v60, %v1040_v59  ;;  %v409_v2 = vrot.slane %v1040_v59, 6  ;;  %v411_v3 = vrot.slane %v349_v60, 6  ;;  %v397_v4 = vrot.slane %v1040_v59, 5 }
 0x14f   : > { %v399_v5 = vrot.slane %v349_v60, 5  ;;  %v421_v6 = vrot.slane %v1040_v59, 7  ;;  %v423_v7 = vrot.slane %v349_v60, 7  ;;  %v354_v8 = vrot.slane %v1040_v59, 1 }
 0x150   : > { %841 = vmatmul.mubr.msk.bf16.vlgmr.msra.gmra.mxu1 %vm275_vm0, %v447_v1  ;;  %v410_v9 = vsel %vm407_vm3, %v408_v58, %v409_v2  ;;  %v412_v10 = vsel %vm407_vm3, %v409_v2, %v411_v3  ;;  %v398_v11 = vsel %vm395_vm4, %v396_v61, %v397_v4  ;;  %v356_v12 = vrot.slane %v349_v60, 1 }
 0x151   : > { %v867_v13 = vpack.i.bf16 %v412_v10, %v410_v9  ;;  %v400_v14 = vsel %vm395_vm4, %v397_v4, %v399_v5  ;;  %v422_v19 = vsel %vm419_vm5, %v420_v62, %v421_v6  ;;  %v424_v20 = vsel %vm419_vm5, %v421_v6, %v423_v7 }
 0x152   : > { %v857_v18 = vpack.i.bf16 %v400_v14, %v398_v11  ;;  %v355_v21 = vsel %vm352_vm6, %v353_v15, %v354_v8  ;;  %v357_v22 = vsel %vm352_vm6, %v354_v8, %v356_v12  ;;  %v366_v23 = vrot.slane %v1040_v59, 2 }
 0x153   : > { %868 = vrot.lane.b32.xlu0 %v867_v13, %s924_s27  ;;  %v368_v24 = vrot.slane %v349_v60, 2  ;;  %v389_v26 = vrot.slane %v1040_v59, 4  ;;  %v391_v27 = vrot.slane %v349_v60, 4  ;;  %v877_v29 = vpack.i.bf16 %v424_v20, %v422_v19 }
 0x154   : > { %858 = vrot.lane.b32.xlu1 %v857_v18, %s921_s7  ;;  %v862_v31 = vpack.i.bf16 %v357_v22, %v355_v21  ;;  %v367_v33 = vsel %vm364_vm7, %v365_v30, %v366_v23  ;;  %v378_v35 = vrot.slane %v1040_v59, 3  ;;  %v380_v36 = vrot.slane %v349_v60, 3 }
 0x155   : > { %v392_v32 = vsel %vm341_vm2, %v389_v26, %v391_v27  ;;  %v369_v34 = vsel %vm364_vm7, %v366_v23, %v368_v24  ;;  %v390_v49 = vsel %vm341_vm2, %v388_v44, %v389_v26 }
 0x156   : > { %v872_v38 = vpack.i.bf16 %v369_v34, %v367_v33  ;;  %v379_v39 = vsel %vm376_vm8, %v377_v37, %v378_v35  ;;  %v381_v40 = vsel %vm376_vm8, %v378_v35, %v380_v36 }
 0x157   : > { %878 = vrot.lane.b32.xlu0 %v877_v29, %s925_s10  ;;  %v882_v41 = vpack.i.bf16 %v381_v40, %v379_v39 }
 0x158   : > { %863 = vrot.lane.b32.xlu1 %v862_v31, %s921_s7 }
 0x15c   : > { %873 = vrot.lane.b32.xlu1 %v872_v38, %s924_s27 }
 0x160   : > { %883 = vrot.lane.b32.xlu1 %v882_v41, %s925_s10 }
 0x1c5   : > { %v869_v42 = vpop.permute.xlu0 %868 }
 0x1c6   : > { %v859_v43 = vpop.permute.xlu1 %858  ;;  %v871_v45 = vunpack.i.h.bf16 %v869_v42  ;;  %v870_v46 = vunpack.i.l.bf16 %v869_v42 }
 0x1c7   : > { %v861_v47 = vunpack.i.h.bf16 %v859_v43  ;;  %v860_v48 = vunpack.i.l.bf16 %v859_v43 }
 0x1c9   : > { %v879_v50 = vpop.permute.xlu0 %878  ;;  %v439_v51 = vsel %vm275_vm0, %v390_v49, %v860_v48  ;;  %v440_v52 = vsel %vm275_vm0, %v392_v32, %v861_v47 }
 0x1ca   : > { %v881_v53 = vunpack.i.h.bf16 %v879_v50  ;;  %v880_v54 = vunpack.i.l.bf16 %v879_v50  ;;  %v864_v56 = vpop.permute.xlu1 %863  ;;  %v441_v57 = vsel %vm433_vm9, %v439_v51, %v870_v46  ;;  %v442_v58 = vsel %vm433_vm9, %v440_v52, %v871_v45 }
 0x1cb   : > { %v866_v0 = vunpack.i.h.bf16 %v864_v56  ;;  %v865_v1 = vunpack.i.l.bf16 %v864_v56 }
 0x1cc   : > { %v443_v60 = vsel %vm436_vm10, %v441_v57, %v880_v54  ;;  %v444_v61 = vsel %vm436_vm10, %v442_v58, %v881_v53 }
 0x1cd   : > { %v446_v62 = vpack.c.bf16 %v444_v61, %v443_v60  ;;  %v432_v5 = vsel %vm275_vm0, %v1040_v59, %v866_v0  ;;  %v431_v6 = vsel %vm275_vm0, %v1036_v55, %v865_v1  ;;  %v786_v55 = vld [vmem:[%s1120_s5] ss:$0 sm:$0xff] }
 0x1ce   : > { %v874_v63 = vpop.permute.xlu1 %873 }
 0x1cf   : > { %634 = vmatprep.mubr.bf16.mxu0 %v446_v62  ;;  %v876_v2 = vunpack.i.h.bf16 %v874_v63  ;;  %v875_v3 = vunpack.i.l.bf16 %v874_v63 }
 0x1d1   : > { %v434_v9 = vsel %vm433_vm9, %v431_v6, %v875_v3  ;;  %v435_v10 = vsel %vm433_vm9, %v432_v5, %v876_v2 }
 0x1d2   : > { %v884_v4 = vpop.permute.xlu1 %883 }
 0x1d3   : > { %v886_v7 = vunpack.i.h.bf16 %v884_v4  ;;  %v885_v8 = vunpack.i.l.bf16 %v884_v4 }
 0x1d5   : > { %v437_v11 = vsel %vm436_vm10, %v434_v9, %v885_v8  ;;  %v438_v12 = vsel %vm436_vm10, %v435_v10, %v886_v7 }
 0x1d6   : > { %v445_v13 = vpack.c.bf16 %v438_v12, %v437_v11 }
 0x1d8   : > { %635 = vmatmul.mubr.bf16.vlgmr.msra.gmra.mxu0 %v445_v13 }
 0x210   : > { %v677_v14 = vpop.f32.mrf.mxu1 }
 0x212   : > { %v842_v15 = vpop.f32.mrf.mxu1 }
 0x214   : > { %v680_v16 = vpop.f32.mrf.mxu1 }
 0x216   : > { %v843_v17 = vpop.f32.mrf.mxu1 }
 0x298   : > { %v827_v59 = vpop.f32.mrf.mxu0 }
 0x29a   : > { %v828_v18 = vpop.f32.mrf.mxu0 }
 0x29b   : > { %v829_v19 = vadd.f32 %v828_v18, %v827_v59 }
 0x29c   : > { %v830_v20 = vpop.f32.mrf.mxu0 }
 0x29d   : > { %v637_v21 = vadd.f32 %v829_v19, %v786_v55 }
 0x29e   : > { %v831_v22 = vpop.f32.mrf.mxu0 }
 0x29f   : > { %v678_v23 = vadd.f32 %v677_v14, %v637_v21  ;;  %v832_v24 = vadd.f32 %v831_v22, %v830_v20 }
 0x2a1   : > { %v684_v25 = vmul.f32 0.33333334, %v678_v23  ;;  %v640_v26 = vadd.f32 %v832_v24, %v786_v55 }
 0x2a3   : > { %v688_v27 = vmul.f32 0.044715, %v684_v25  ;;  %v681_v28 = vadd.f32 %v680_v16, %v640_v26  ;;  %v686_v40 = vmul.f32 0.5, %v684_v25 }
 0x2a5   : > { %v690_v29 = vmul.f32 %v688_v27, %v684_v25  ;;  %v685_v30 = vmul.f32 0.33333334, %v681_v28 }
 0x2a7   : > { %v692_v31 = vmul.f32 %v690_v29, %v684_v25  ;;  %v689_v32 = vmul.f32 0.044715, %v685_v30  ;;  %v687_v44 = vmul.f32 0.5, %v685_v30 }
 0x2a9   : > { %v694_v33 = vadd.f32 %v692_v31, %v684_v25  ;;  %v691_v34 = vmul.f32 %v689_v32, %v685_v30 }
 0x2ab   : > { %v696_v35 = vmul.f32 0.7978846, %v694_v33  ;;  %v693_v36 = vmul.f32 %v691_v34, %v685_v30 }
 0x2ad   : > { %909 = vtanh.f32 %v696_v35  ;;  %v695_v37 = vadd.f32 %v693_v36, %v685_v30 }
 0x2af   : > { %v697_v38 = vmul.f32 0.7978846, %v695_v37 }
 0x2b1   : > { %911 = vtanh.f32 %v697_v38 }
 0x2ba   : > { %v910_v39 = vpop.eup %909 }
 0x2bb   : > { %v700_v41 = vadd.f32 1.0, %v910_v39 }
 0x2bd   : > { %v702_v42 = vmul.f32 %v700_v41, %v686_v40 }
 0x2be   : > { %v912_v43 = vpop.eup %911 }
 0x2bf   : > { %704 = vst [vmem:[%s271_s14] sm:$0xff] %v702_v42  ;;  %v701_v45 = vadd.f32 1.0, %v912_v43 }
 0x2c1   : > { %v703_v46 = vmul.f32 %v701_v45, %v687_v44 }
 0x2c3   : > { %705 = vst [vmem:[%s271_s14 + $0x8] sm:$0xff] %v703_v46 }
 0x2c4 PF: > { %s16_s21 = sadd.s32 1, %s919_s21  }
 0x2c5   : > { %p13_p4 = scmp.ge.s32.totalorder %s16_s21, 4  }
 0x2c7   :  { %15 = sbr.rel (!%p13_p4) target bundleno = 1 (0x1), region = 77 }

</bundles_post_ra>
